<compile_context>
chip_gen: v5e
topology: v5e:2x2
jax: 0.10.0
libtpu: 0.0.40
codegen_flags: <defaults>
</compile_context>

<pallas_src>
import math
import functools

import jax
import jax.numpy as jnp
from jax import lax
from jax.experimental import pallas as pl
from jax.experimental.pallas import tpu as pltpu


def _round_up(x, m):
    return ((x + m - 1) // m) * m


def _tpu_vmem_capacity_bytes():
    try:
        return int(pltpu.get_tpu_info().vmem_capacity_bytes)
    except Exception:
        return 64 * 1024 * 1024          # conservative fallback (v7x per-TC)


def _layernorm_masked(x, w, b, lane_mask, inv_n, eps=1e-5):
    """LayerNorm over the real (unpadded) lanes of a lane-padded f32 array.

    lane_mask is 1.0 on real lanes / 0.0 on pad lanes; inv_n = 1/n_real.
    gamma/beta are zero-padded so padded output lanes come out exactly 0.
    """
    xm = x * lane_mask
    mu = jnp.sum(xm, axis=-1, keepdims=True) * inv_n
    d = (x - mu) * lane_mask
    var = jnp.sum(d * d, axis=-1, keepdims=True) * inv_n
    return d * lax.rsqrt(var + eps) * w + b


# ------------------- kernel 1: LN1 + causal self-attention + residual -------------------
def attn_block_kernel(x_ref, ln1w_ref, ln1b_ref, wqkv_ref, bqkv_ref,
                      wo_ref, bo_ref, o_ref, y_ref, *, n_head, n_embd):
    f32, bf16 = jnp.float32, jnp.bfloat16

    x = x_ref[0]                                     # (Tp, Cp) f32
    Tp, Cp = x.shape
    C = n_embd
    hd = C // n_head

    lane = lax.broadcasted_iota(jnp.int32, (1, Cp), 1)
    lane_mask = (lane < C).astype(f32)
    xn = _layernorm_masked(x, ln1w_ref[...], ln1b_ref[...], lane_mask,
                           f32(1.0 / C))

    # Fused QKV projection: full MXU width (N = 3*Cp).  The 1/sqrt(n_embd)
    # scale is already folded into the q columns of wqkv/bqkv.
    qkv = (jnp.dot(xn.astype(bf16), wqkv_ref[...], preferred_element_type=f32)
           + bqkv_ref[...]).astype(bf16)             # (Tp, 3*Cp) bf16

    # Finite additive causal bias, hoisted out of the head loop.
    row = lax.broadcasted_iota(jnp.int32, (Tp, Tp), 0)
    col = lax.broadcasted_iota(jnp.int32, (Tp, Tp), 1)
    mask_bias = jnp.where(col <= row, 0.0, -1e30).astype(f32)

    # Static Python loop over heads: all slices / stores use static lane
    # offsets; each head's (Tp,Tp) temporaries die at the y_ref store.
    # TODO(synk): flash-style query/KV tiling once per-head (T,T) scores no
    #             longer fit VMEM (T >~ 2048) or for a tighter v7x fit.
    for h in range(n_head):
        lo = h * hd
        qh = qkv[:, lo:lo + hd]                                  # (Tp, hd)
        kh = qkv[:, Cp + lo:Cp + lo + hd]
        vh = qkv[:, 2 * Cp + lo:2 * Cp + lo + hd]

        # q @ k^T without materializing an explicit transpose of k.
        att = lax.dot_general(qh, kh, (((1,), (1,)), ((), ())),
                              preferred_element_type=f32)        # (Tp, Tp) f32
        att = att + mask_bias
        m = jnp.max(att, axis=-1, keepdims=True)
        # exp in bf16 (v6e/v7x bf16 EUP); row-sum stays f32.
        p = jnp.exp((att - m).astype(bf16))                      # (Tp, Tp) bf16
        s = jnp.sum(p.astype(f32), axis=-1, keepdims=True)       # (Tp, 1)  f32

        # Deferred softmax normalization: scale the small (Tp, hd) AV result
        # instead of the (Tp, Tp) probability matrix.
        yh = jnp.dot(p, vh, preferred_element_type=f32)          # (Tp, hd) f32
        y_ref[:, lo:lo + hd] = yh * pl.reciprocal(s, approx=True)

    if Cp > C:   # keep padded lanes exactly zero (scratch is uninitialized)
        y_ref[:, C:] = jnp.zeros((Tp, Cp - C), f32)

    # Single full-width / full-depth output projection (K = Cp, N = Cp).
    out = jnp.dot(y_ref[...].astype(bf16), wo_ref[...],
                  preferred_element_type=f32) + bo_ref[...]
    o_ref[0] = x + out


# ------------------- kernel 2: LN2 + MLP(GELU tanh) + residual -------------------
def mlp_block_kernel(x_ref, ln2w_ref, ln2b_ref, wfc_ref, bfc_ref,
                     wp2_ref, bp2_ref, o_ref, *, n_embd):
    f32, bf16 = jnp.float32, jnp.bfloat16

    x1 = x_ref[0]                                    # (TQ, Cp) f32
    TQ, Cp = x1.shape
    C = n_embd

    lane = lax.broadcasted_iota(jnp.int32, (1, Cp), 1)
    lane_mask = (lane < C).astype(f32)
    xn = _layernorm_masked(x1, ln2w_ref[...], ln2b_ref[...], lane_mask,
                           f32(1.0 / C))

    u = jnp.dot(xn.astype(bf16), wfc_ref[...],
                preferred_element_type=f32) + bfc_ref[...]       # (TQ, Hp)
    # GELU(approximate='tanh'): cubic term in f32, tanh evaluated in bf16.
    arg = 0.7978845608028654 * (u + 0.044715 * u * u * u)
    t = jnp.tanh(arg.astype(bf16)).astype(f32)
    g = 0.5 * u * (1.0 + t)
    mlp = jnp.dot(g.astype(bf16), wp2_ref[...],
                  preferred_element_type=f32) + bp2_ref[...]     # (TQ, Cp)

    o_ref[0] = x1 + mlp


# ------------------- one-time parameter preparation -------------------
def prepare_block_params(params, *, n_head):
    """Pad / re-lay-out / cast the Block parameters once (call it one time,
    NOT per forward).  Folds the 1/sqrt(n_embd) attention scale into q."""
    (ln1w, ln1b, wqkv, bqkv, wo, bo, ln2w, ln2b, wfc, bfc, wp2, bp2) = params
    f32, bf16 = jnp.float32, jnp.bfloat16

    C = ln1w.shape[-1]
    assert C % n_head == 0
    H = 4 * C
    Cp = _round_up(C, 128)
    Hp = _round_up(H, 128)
    scale = 1.0 / math.sqrt(C)          # matches reference: 1/sqrt(n_embd)

    def padto(a, shape):
        return jnp.pad(a, [(0, s - d) for d, s in zip(a.shape, shape)])

    wqkv = wqkv.astype(f32)
    bqkv = bqkv.astype(f32).reshape(1, 3 * C)
    wqkv_p = jnp.zeros((Cp, 3 * Cp), f32)
    bqkv_p = jnp.zeros((1, 3 * Cp), f32)
    for i, s in enumerate((scale, 1.0, 1.0)):        # q (pre-scaled), k, v
        wqkv_p = wqkv_p.at[:C, i * Cp:i * Cp + C].set(wqkv[:, i * C:(i + 1) * C] * s)
        bqkv_p = bqkv_p.at[:, i * Cp:i * Cp + C].set(bqkv[:, i * C:(i + 1) * C] * s)

    return (
        padto(ln1w.astype(f32).reshape(1, C), (1, Cp)),
        padto(ln1b.astype(f32).reshape(1, C), (1, Cp)),
        wqkv_p.astype(bf16),
        bqkv_p,
        padto(wo.astype(f32), (Cp, Cp)).astype(bf16),
        padto(bo.astype(f32).reshape(1, C), (1, Cp)),
        padto(ln2w.astype(f32).reshape(1, C), (1, Cp)),
        padto(ln2b.astype(f32).reshape(1, C), (1, Cp)),
        padto(wfc.astype(f32), (Cp, Hp)).astype(bf16),
        padto(bfc.astype(f32).reshape(1, H), (1, Hp)),
        padto(wp2.astype(f32), (Hp, Cp)).astype(bf16),
        padto(bp2.astype(f32).reshape(1, C), (1, Cp)),
    )


# ------------------- forward wrapper -------------------
def block_forward(x, prepared, *, n_head):
    (ln1w_p, ln1b_p, wqkv_p, bqkv_p, wo_p, bo_p,
     ln2w_p, ln2b_p, wfc_p, bfc_p, wp2_p, bp2_p) = prepared

    B, T, C = x.shape
    assert C % n_head == 0
    Cp = wo_p.shape[0]
    Hp = wfc_p.shape[1]
    Tp = _round_up(T, 8)
    f32 = jnp.float32

    xp = x.astype(f32)
    if (Tp, Cp) != (T, C):
        xp = jnp.pad(xp, ((0, 0), (0, Tp - T), (0, Cp - C)))

    # Generation-aware VMEM budget (~60% of capacity) and MLP query tile.
    vmem_cap = _tpu_vmem_capacity_bytes()
    vmem_limit = max(32 * 1024 * 1024, min(int(0.6 * vmem_cap), 96 * 1024 * 1024))
    tq_cap = 512 if vmem_cap >= 96 * 1024 * 1024 else 256
    TQ = next(c for c in (tq_cap, 256, 128, 64, 32, 16, 8)
              if c <= Tp and Tp % c == 0)

    # ---------- kernel 1: ln_1 + causal self-attention + residual ----------
    cst1 = lambda shape: pl.BlockSpec(shape, lambda b: (0,) * len(shape))
    x1 = pl.pallas_call(
        functools.partial(attn_block_kernel, n_head=n_head, n_embd=C),
        out_shape=jax.ShapeDtypeStruct((B, Tp, Cp), f32),
        grid_spec=pltpu.PrefetchScalarGridSpec(
            num_scalar_prefetch=0,
            grid=(B,),
            in_specs=[
                pl.BlockSpec((1, Tp, Cp), lambda b: (b, 0, 0)),    # x
                cst1((1, Cp)), cst1((1, Cp)),                      # ln1 w, b
                cst1((Cp, 3 * Cp)), cst1((1, 3 * Cp)),             # Wqkv, bqkv
                cst1((Cp, Cp)), cst1((1, Cp)),                     # Wo, bo
            ],
            out_specs=pl.BlockSpec((1, Tp, Cp), lambda b: (b, 0, 0)),
            scratch_shapes=[pltpu.VMEM((Tp, Cp), f32)],            # per-head y
        ),
        compiler_params=pltpu.CompilerParams(
            dimension_semantics=("parallel",),
            vmem_limit_bytes=vmem_limit),
    )(xp, ln1w_p, ln1b_p, wqkv_p, bqkv_p, wo_p, bo_p)

    # ---------- kernel 2: ln_2 + MLP(GELU tanh) + residual (T-tiled) ----------
    cst2 = lambda shape: pl.BlockSpec(shape, lambda b, t: (0,) * len(shape))
    out = pl.pallas_call(
        functools.partial(mlp_block_kernel, n_embd=C),
        out_shape=jax.ShapeDtypeStruct((B, Tp, Cp), f32),
        grid_spec=pltpu.PrefetchScalarGridSpec(
            num_scalar_prefetch=0,
            grid=(B, Tp // TQ),
            in_specs=[
                pl.BlockSpec((1, TQ, Cp), lambda b, t: (b, t, 0)),  # x1
                cst2((1, Cp)), cst2((1, Cp)),                       # ln2 w, b
                cst2((Cp, Hp)), cst2((1, Hp)),                      # c_fc W, b
                cst2((Hp, Cp)), cst2((1, Cp)),                      # c_proj W, b
            ],
            out_specs=pl.BlockSpec((1, TQ, Cp), lambda b, t: (b, t, 0)),
        ),
        compiler_params=pltpu.CompilerParams(
            dimension_semantics=("parallel", "parallel"),
            vmem_limit_bytes=vmem_limit),
    )(x1, ln2w_p, ln2b_p, wfc_p, bfc_p, wp2_p, bp2_p)

    if (Tp, Cp) != (T, C):
        out = out[:, :T, :C]
    return out.astype(x.dtype)


# ------------------- pure-JAX reference (for verification) -------------------
def _layernorm_ref(x, w, b, eps=1e-5):
    mu = jnp.mean(x, axis=-1, keepdims=True)
    var = jnp.mean((x - mu) ** 2, axis=-1, keepdims=True)
    return (x - mu) * lax.rsqrt(var + eps) * w + b


def _gelu_tanh_f32(x):
    c = math.sqrt(2.0 / math.pi)
    return 0.5 * x * (1.0 + jnp.tanh(c * (x + 0.044715 * x * x * x)))


def block_reference(x, params, *, n_head):
    (ln1w, ln1b, wqkv, bqkv, wo, bo, ln2w, ln2b, wfc, bfc, wp2, bp2) = params
    B, T, C = x.shape
    hd = C // n_head

    xn = _layernorm_ref(x, ln1w[0], ln1b[0])
    qkv = xn @ wqkv + bqkv[0]
    q, k, v = jnp.split(qkv, 3, axis=-1)
    q = q.reshape(B, T, n_head, hd).transpose(0, 2, 1, 3)
    k = k.reshape(B, T, n_head, hd).transpose(0, 2, 1, 3)
    v = v.reshape(B, T, n_head, hd).transpose(0, 2, 1, 3)
    att = jnp.einsum('bhqd,bhkd->bhqk', q, k) * (1.0 / math.sqrt(C))
    mask = jnp.tril(jnp.ones((T, T), bool))
    att = jnp.where(mask, att, -jnp.inf)
    att = jax.nn.softmax(att, axis=-1)
    y = jnp.einsum('bhqk,bhkd->bhqd', att, v)
    y = y.transpose(0, 2, 1, 3).reshape(B, T, C)
    x1 = x + (y @ wo + bo[0])

    x2n = _layernorm_ref(x1, ln2w[0], ln2b[0])
    h = _gelu_tanh_f32(x2n @ wfc + bfc[0])
    return x1 + (h @ wp2 + bp2[0])


# ------------------- self-test -------------------
def _make_params(key, C):
    ks = jax.random.split(key, 12)

    def rnd(k, shape, scale=0.02):
        return (scale * jax.random.normal(k, shape)).astype(jnp.float32)

    return (
        (1.0 + 0.1 * jax.random.normal(ks[8], (1, C))).astype(jnp.float32),  # ln1 w
        rnd(ks[9], (1, C), 0.05),                                            # ln1 b
        rnd(ks[0], (C, 3 * C)),                                              # c_attn W
        rnd(ks[1], (1, 3 * C)),                                              # c_attn b
        rnd(ks[2], (C, C)),                                                  # attn c_proj W
        rnd(ks[3], (1, C)),                                                  # attn c_proj b
        (1.0 + 0.1 * jax.random.normal(ks[10], (1, C))).astype(jnp.float32), # ln2 w
        rnd(ks[11], (1, C), 0.05),                                           # ln2 b
        rnd(ks[4], (C, 4 * C)),                                              # c_fc W
        rnd(ks[5], (1, 4 * C)),                                              # c_fc b
        rnd(ks[6], (4 * C, C)),                                              # mlp c_proj W
        rnd(ks[7], (1, C)),                                                  # mlp c_proj b
    )


def _run_case(case_key, B, T, C, n_head):
    kp, kx = jax.random.split(case_key)
    params = _make_params(kp, C)
    x = jax.random.normal(kx, (B, T, C), jnp.float32)

    prepared = prepare_block_params(params, n_head=n_head)      # one-time prep
    fwd = jax.jit(functools.partial(block_forward, n_head=n_head))
    out = jax.block_until_ready(fwd(x, prepared))

    ref = block_reference(x, params, n_head=n_head)
    assert out.shape == x.shape
    err = float(jnp.max(jnp.abs(out - ref)))
    # bf16 MXU operands / bf16 exp,tanh / approx reciprocal -> loose tolerance.
    assert err < 1e-2, f"max abs error {err}"
    return err


if __name__ == "__main__":
    root = jax.random.PRNGKey(0)
    k1, k2 = jax.random.split(root)
    # Case 1: tiny shapes (exercise lane padding C=32 -> Cp=128).
    _run_case(k1, B=2, T=8, C=32, n_head=4)
    # Case 2: head_dim=64, two lane tiles, multiple MLP T-tiles.
    _run_case(k2, B=1, T=24, C=192, n_head=3)
    print("KERNEL_OK")
</pallas_src>

<mosaic_0001>
module attributes {stable_mosaic.version = 11 : i64} {
  func.func @attn_block_kernel(%arg0: i32, %arg1: memref<1x8x128xf32, #tpu.memory_space<vmem>>, %arg2: memref<1x128xf32, #tpu.memory_space<vmem>>, %arg3: memref<1x128xf32, #tpu.memory_space<vmem>>, %arg4: memref<128x384xbf16, #tpu.memory_space<vmem>>, %arg5: memref<1x384xf32, #tpu.memory_space<vmem>>, %arg6: memref<128x128xbf16, #tpu.memory_space<vmem>>, %arg7: memref<1x128xf32, #tpu.memory_space<vmem>>, %arg8: memref<1x8x128xf32, #tpu.memory_space<vmem>>, %arg9: memref<8x128xf32, #tpu.memory_space<vmem>>) attributes {dimension_semantics = [#tpu.dimension_semantics<parallel>], iteration_bounds = array<i64: 2>, scalar_prefetch = 0 : i64, scratch_operands = 1 : i64, tpu.core_type = #tpu.core_type<tc>, window_params = [{transform_indices = @transform_0, window_bounds = array<i64: 1, 8, 128>}, {pipeline_mode = #tpu.pipeline_mode<synchronous>, transform_indices = @transform_1, window_bounds = array<i64: 1, 128>}, {pipeline_mode = #tpu.pipeline_mode<synchronous>, transform_indices = @transform_2, window_bounds = array<i64: 1, 128>}, {pipeline_mode = #tpu.pipeline_mode<synchronous>, transform_indices = @transform_3, window_bounds = array<i64: 128, 384>}, {pipeline_mode = #tpu.pipeline_mode<synchronous>, transform_indices = @transform_4, window_bounds = array<i64: 1, 384>}, {pipeline_mode = #tpu.pipeline_mode<synchronous>, transform_indices = @transform_5, window_bounds = array<i64: 128, 128>}, {pipeline_mode = #tpu.pipeline_mode<synchronous>, transform_indices = @transform_6, window_bounds = array<i64: 1, 128>}, {transform_indices = @transform_7, window_bounds = array<i64: 1, 8, 128>}]} {
    %c0 = arith.constant 0 : index
    %c0_0 = arith.constant 0 : index
    %c0_1 = arith.constant 0 : index
    %0 = vector.load %arg1[%c0, %c0_0, %c0_1] : memref<1x8x128xf32, #tpu.memory_space<vmem>>, vector<1x8x128xf32>
    %1 = vector.shape_cast %0 : vector<1x8x128xf32> to vector<8x128xf32>
    %2 = tpu.iota {dimensions = array<i32: 1>} : vector<1x128xi32>
    %c32_i32 = arith.constant 32 : i32
    %3 = vector.broadcast %c32_i32 : i32 to vector<1x128xi32>
    %4 = arith.cmpi slt, %2, %3 : vector<1x128xi32>
    %5 = arith.extui %4 : vector<1x128xi1> to vector<1x128xi32>
    %6 = arith.sitofp %5 : vector<1x128xi32> to vector<1x128xf32>
    %c0_2 = arith.constant 0 : index
    %c0_3 = arith.constant 0 : index
    %7 = vector.load %arg2[%c0_2, %c0_3] : memref<1x128xf32, #tpu.memory_space<vmem>>, vector<1x128xf32>
    %c0_4 = arith.constant 0 : index
    %c0_5 = arith.constant 0 : index
    %8 = vector.load %arg3[%c0_4, %c0_5] : memref<1x128xf32, #tpu.memory_space<vmem>>, vector<1x128xf32>
    %9 = vector.broadcast %6 : vector<1x128xf32> to vector<8x128xf32>
    %10 = arith.mulf %1, %9 : vector<8x128xf32>
    %cst = arith.constant dense<0.000000e+00> : vector<8xf32>
    %11 = vector.multi_reduction <add>, %10, %cst [1] : vector<8x128xf32> to vector<8xf32>
    %12 = vector.shape_cast %11 : vector<8xf32> to vector<8x1xf32>
    %cst_6 = arith.constant 3.125000e-02 : f32
    %13 = vector.broadcast %cst_6 : f32 to vector<8x1xf32>
    %14 = arith.mulf %12, %13 : vector<8x1xf32>
    %15 = vector.broadcast %14 : vector<8x1xf32> to vector<8x128xf32>
    %16 = arith.subf %1, %15 : vector<8x128xf32>
    %17 = vector.broadcast %6 : vector<1x128xf32> to vector<8x128xf32>
    %18 = arith.mulf %16, %17 : vector<8x128xf32>
    %19 = arith.mulf %18, %18 : vector<8x128xf32>
    %cst_7 = arith.constant dense<0.000000e+00> : vector<8xf32>
    %20 = vector.multi_reduction <add>, %19, %cst_7 [1] : vector<8x128xf32> to vector<8xf32>
    %21 = vector.shape_cast %20 : vector<8xf32> to vector<8x1xf32>
    %cst_8 = arith.constant 3.125000e-02 : f32
    %22 = vector.broadcast %cst_8 : f32 to vector<8x1xf32>
    %23 = arith.mulf %21, %22 : vector<8x1xf32>
    %cst_9 = arith.constant 9.99999974E-6 : f32
    %24 = vector.broadcast %cst_9 : f32 to vector<8x1xf32>
    %25 = arith.addf %23, %24 : vector<8x1xf32>
    %26 = math.rsqrt %25 : vector<8x1xf32>
    %27 = vector.broadcast %26 : vector<8x1xf32> to vector<8x128xf32>
    %28 = arith.mulf %18, %27 : vector<8x128xf32>
    %29 = vector.broadcast %7 : vector<1x128xf32> to vector<8x128xf32>
    %30 = arith.mulf %28, %29 : vector<8x128xf32>
    %31 = vector.broadcast %8 : vector<1x128xf32> to vector<8x128xf32>
    %32 = arith.addf %30, %31 : vector<8x128xf32>
    %33 = arith.truncf %32 : vector<8x128xf32> to vector<8x128xbf16>
    %c0_10 = arith.constant 0 : index
    %c0_11 = arith.constant 0 : index
    %34 = vector.load %arg4[%c0_10, %c0_11] : memref<128x384xbf16, #tpu.memory_space<vmem>>, vector<128x384xbf16>
    %cst_12 = arith.constant dense<0.000000e+00> : vector<8x384xf32>
    %35 = tpu.matmul %33, %34, %cst_12 {dimension_numbers = #tpu.dot_dimension_numbers<[1], [0], [0], [1], [0, 0, 1, 1], [], []>} : vector<8x128xbf16>, vector<128x384xbf16>, vector<8x384xf32> -> vector<8x384xf32>
    %c0_13 = arith.constant 0 : index
    %c0_14 = arith.constant 0 : index
    %36 = vector.load %arg5[%c0_13, %c0_14] : memref<1x384xf32, #tpu.memory_space<vmem>>, vector<1x384xf32>
    %37 = vector.broadcast %36 : vector<1x384xf32> to vector<8x384xf32>
    %38 = arith.addf %35, %37 : vector<8x384xf32>
    %39 = arith.truncf %38 : vector<8x384xf32> to vector<8x384xbf16>
    %40 = tpu.iota {dimensions = array<i32: 0>} : vector<8x8xi32>
    %41 = tpu.iota {dimensions = array<i32: 1>} : vector<8x8xi32>
    %42 = arith.cmpi sle, %41, %40 : vector<8x8xi32>
    %cst_15 = arith.constant 0.000000e+00 : f32
    %cst_16 = arith.constant -1.000000e+30 : f32
    %43 = vector.broadcast %cst_15 : f32 to vector<8x8xf32>
    %44 = vector.broadcast %cst_16 : f32 to vector<8x8xf32>
    %45 = arith.select %42, %43, %44 : vector<8x8xi1>, vector<8x8xf32>
    %46 = vector.extract_strided_slice %39 {offsets = [0, 0], sizes = [8, 8], strides = [1, 1]} : vector<8x384xbf16> to vector<8x8xbf16>
    %47 = vector.extract_strided_slice %39 {offsets = [0, 128], sizes = [8, 8], strides = [1, 1]} : vector<8x384xbf16> to vector<8x8xbf16>
    %48 = vector.extract_strided_slice %39 {offsets = [0, 256], sizes = [8, 8], strides = [1, 1]} : vector<8x384xbf16> to vector<8x8xbf16>
    %cst_17 = arith.constant dense<0.000000e+00> : vector<8x8xf32>
    %49 = tpu.matmul %46, %47, %cst_17 {dimension_numbers = #tpu.dot_dimension_numbers<[1], [1], [0], [0], [0, 0, 1, 0], [], []>} : vector<8x8xbf16>, vector<8x8xbf16>, vector<8x8xf32> -> vector<8x8xf32>
    %50 = arith.addf %49, %45 : vector<8x8xf32>
    %cst_18 = arith.constant dense<0xFF800000> : vector<8xf32>
    %51 = vector.multi_reduction <maximumf>, %50, %cst_18 [1] : vector<8x8xf32> to vector<8xf32>
    %52 = vector.shape_cast %51 : vector<8xf32> to vector<8x1xf32>
    %53 = vector.broadcast %52 : vector<8x1xf32> to vector<8x8xf32>
    %54 = arith.subf %50, %53 : vector<8x8xf32>
    %55 = arith.truncf %54 : vector<8x8xf32> to vector<8x8xbf16>
    %56 = math.exp %55 : vector<8x8xbf16>
    %57 = arith.extf %56 : vector<8x8xbf16> to vector<8x8xf32>
    %cst_19 = arith.constant dense<0.000000e+00> : vector<8xf32>
    %58 = vector.multi_reduction <add>, %57, %cst_19 [1] : vector<8x8xf32> to vector<8xf32>
    %59 = vector.shape_cast %58 : vector<8xf32> to vector<8x1xf32>
    %cst_20 = arith.constant dense<0.000000e+00> : vector<8x8xf32>
    %60 = tpu.matmul %56, %48, %cst_20 {dimension_numbers = #tpu.dot_dimension_numbers<[1], [0], [0], [1], [0, 0, 1, 1], [], []>} : vector<8x8xbf16>, vector<8x8xbf16>, vector<8x8xf32> -> vector<8x8xf32>
    %61 = tpu.reciprocal %59 {approx = true} : vector<8x1xf32> -> vector<8x1xf32>
    %62 = vector.broadcast %61 : vector<8x1xf32> to vector<8x8xf32>
    %63 = arith.mulf %60, %62 : vector<8x8xf32>
    %c0_21 = arith.constant 0 : index
    %c0_22 = arith.constant 0 : index
    %64 = vector.load %arg9[%c0_21, %c0_22] : memref<8x128xf32, #tpu.memory_space<vmem>>, vector<8x8xf32>
    tpu.vector_store %arg9[%c0_21, %c0_22], %63 {strides = array<i32>} : memref<8x128xf32, #tpu.memory_space<vmem>>, vector<8x8xf32>,
    %65 = vector.extract_strided_slice %39 {offsets = [0, 8], sizes = [8, 8], strides = [1, 1]} : vector<8x384xbf16> to vector<8x8xbf16>
    %66 = vector.extract_strided_slice %39 {offsets = [0, 136], sizes = [8, 8], strides = [1, 1]} : vector<8x384xbf16> to vector<8x8xbf16>
    %67 = vector.extract_strided_slice %39 {offsets = [0, 264], sizes = [8, 8], strides = [1, 1]} : vector<8x384xbf16> to vector<8x8xbf16>
    %cst_23 = arith.constant dense<0.000000e+00> : vector<8x8xf32>
    %68 = tpu.matmul %65, %66, %cst_23 {dimension_numbers = #tpu.dot_dimension_numbers<[1], [1], [0], [0], [0, 0, 1, 0], [], []>} : vector<8x8xbf16>, vector<8x8xbf16>, vector<8x8xf32> -> vector<8x8xf32>
    %69 = arith.addf %68, %45 : vector<8x8xf32>
    %cst_24 = arith.constant dense<0xFF800000> : vector<8xf32>
    %70 = vector.multi_reduction <maximumf>, %69, %cst_24 [1] : vector<8x8xf32> to vector<8xf32>
    %71 = vector.shape_cast %70 : vector<8xf32> to vector<8x1xf32>
    %72 = vector.broadcast %71 : vector<8x1xf32> to vector<8x8xf32>
    %73 = arith.subf %69, %72 : vector<8x8xf32>
    %74 = arith.truncf %73 : vector<8x8xf32> to vector<8x8xbf16>
    %75 = math.exp %74 : vector<8x8xbf16>
    %76 = arith.extf %75 : vector<8x8xbf16> to vector<8x8xf32>
    %cst_25 = arith.constant dense<0.000000e+00> : vector<8xf32>
    %77 = vector.multi_reduction <add>, %76, %cst_25 [1] : vector<8x8xf32> to vector<8xf32>
    %78 = vector.shape_cast %77 : vector<8xf32> to vector<8x1xf32>
    %cst_26 = arith.constant dense<0.000000e+00> : vector<8x8xf32>
    %79 = tpu.matmul %75, %67, %cst_26 {dimension_numbers = #tpu.dot_dimension_numbers<[1], [0], [0], [1], [0, 0, 1, 1], [], []>} : vector<8x8xbf16>, vector<8x8xbf16>, vector<8x8xf32> -> vector<8x8xf32>
    %80 = tpu.reciprocal %78 {approx = true} : vector<8x1xf32> -> vector<8x1xf32>
    %81 = vector.broadcast %80 : vector<8x1xf32> to vector<8x8xf32>
    %82 = arith.mulf %79, %81 : vector<8x8xf32>
    %c0_27 = arith.constant 0 : index
    %c8 = arith.constant 8 : index
    %83 = vector.load %arg9[%c0_27, %c8] : memref<8x128xf32, #tpu.memory_space<vmem>>, vector<8x8xf32>
    tpu.vector_store %arg9[%c0_27, %c8], %82 {strides = array<i32>} : memref<8x128xf32, #tpu.memory_space<vmem>>, vector<8x8xf32>,
    %84 = vector.extract_strided_slice %39 {offsets = [0, 16], sizes = [8, 8], strides = [1, 1]} : vector<8x384xbf16> to vector<8x8xbf16>
    %85 = vector.extract_strided_slice %39 {offsets = [0, 144], sizes = [8, 8], strides = [1, 1]} : vector<8x384xbf16> to vector<8x8xbf16>
    %86 = vector.extract_strided_slice %39 {offsets = [0, 272], sizes = [8, 8], strides = [1, 1]} : vector<8x384xbf16> to vector<8x8xbf16>
    %cst_28 = arith.constant dense<0.000000e+00> : vector<8x8xf32>
    %87 = tpu.matmul %84, %85, %cst_28 {dimension_numbers = #tpu.dot_dimension_numbers<[1], [1], [0], [0], [0, 0, 1, 0], [], []>} : vector<8x8xbf16>, vector<8x8xbf16>, vector<8x8xf32> -> vector<8x8xf32>
    %88 = arith.addf %87, %45 : vector<8x8xf32>
    %cst_29 = arith.constant dense<0xFF800000> : vector<8xf32>
    %89 = vector.multi_reduction <maximumf>, %88, %cst_29 [1] : vector<8x8xf32> to vector<8xf32>
    %90 = vector.shape_cast %89 : vector<8xf32> to vector<8x1xf32>
    %91 = vector.broadcast %90 : vector<8x1xf32> to vector<8x8xf32>
    %92 = arith.subf %88, %91 : vector<8x8xf32>
    %93 = arith.truncf %92 : vector<8x8xf32> to vector<8x8xbf16>
    %94 = math.exp %93 : vector<8x8xbf16>
    %95 = arith.extf %94 : vector<8x8xbf16> to vector<8x8xf32>
    %cst_30 = arith.constant dense<0.000000e+00> : vector<8xf32>
    %96 = vector.multi_reduction <add>, %95, %cst_30 [1] : vector<8x8xf32> to vector<8xf32>
    %97 = vector.shape_cast %96 : vector<8xf32> to vector<8x1xf32>
    %cst_31 = arith.constant dense<0.000000e+00> : vector<8x8xf32>
    %98 = tpu.matmul %94, %86, %cst_31 {dimension_numbers = #tpu.dot_dimension_numbers<[1], [0], [0], [1], [0, 0, 1, 1], [], []>} : vector<8x8xbf16>, vector<8x8xbf16>, vector<8x8xf32> -> vector<8x8xf32>
    %99 = tpu.reciprocal %97 {approx = true} : vector<8x1xf32> -> vector<8x1xf32>
    %100 = vector.broadcast %99 : vector<8x1xf32> to vector<8x8xf32>
    %101 = arith.mulf %98, %100 : vector<8x8xf32>
    %c0_32 = arith.constant 0 : index
    %c16 = arith.constant 16 : index
    %102 = vector.load %arg9[%c0_32, %c16] : memref<8x128xf32, #tpu.memory_space<vmem>>, vector<8x8xf32>
    tpu.vector_store %arg9[%c0_32, %c16], %101 {strides = array<i32>} : memref<8x128xf32, #tpu.memory_space<vmem>>, vector<8x8xf32>,
    %103 = vector.extract_strided_slice %39 {offsets = [0, 24], sizes = [8, 8], strides = [1, 1]} : vector<8x384xbf16> to vector<8x8xbf16>
    %104 = vector.extract_strided_slice %39 {offsets = [0, 152], sizes = [8, 8], strides = [1, 1]} : vector<8x384xbf16> to vector<8x8xbf16>
    %105 = vector.extract_strided_slice %39 {offsets = [0, 280], sizes = [8, 8], strides = [1, 1]} : vector<8x384xbf16> to vector<8x8xbf16>
    %cst_33 = arith.constant dense<0.000000e+00> : vector<8x8xf32>
    %106 = tpu.matmul %103, %104, %cst_33 {dimension_numbers = #tpu.dot_dimension_numbers<[1], [1], [0], [0], [0, 0, 1, 0], [], []>} : vector<8x8xbf16>, vector<8x8xbf16>, vector<8x8xf32> -> vector<8x8xf32>
    %107 = arith.addf %106, %45 : vector<8x8xf32>
    %cst_34 = arith.constant dense<0xFF800000> : vector<8xf32>
    %108 = vector.multi_reduction <maximumf>, %107, %cst_34 [1] : vector<8x8xf32> to vector<8xf32>
    %109 = vector.shape_cast %108 : vector<8xf32> to vector<8x1xf32>
    %110 = vector.broadcast %109 : vector<8x1xf32> to vector<8x8xf32>
    %111 = arith.subf %107, %110 : vector<8x8xf32>
    %112 = arith.truncf %111 : vector<8x8xf32> to vector<8x8xbf16>
    %113 = math.exp %112 : vector<8x8xbf16>
    %114 = arith.extf %113 : vector<8x8xbf16> to vector<8x8xf32>
    %cst_35 = arith.constant dense<0.000000e+00> : vector<8xf32>
    %115 = vector.multi_reduction <add>, %114, %cst_35 [1] : vector<8x8xf32> to vector<8xf32>
    %116 = vector.shape_cast %115 : vector<8xf32> to vector<8x1xf32>
    %cst_36 = arith.constant dense<0.000000e+00> : vector<8x8xf32>
    %117 = tpu.matmul %113, %105, %cst_36 {dimension_numbers = #tpu.dot_dimension_numbers<[1], [0], [0], [1], [0, 0, 1, 1], [], []>} : vector<8x8xbf16>, vector<8x8xbf16>, vector<8x8xf32> -> vector<8x8xf32>
    %118 = tpu.reciprocal %116 {approx = true} : vector<8x1xf32> -> vector<8x1xf32>
    %119 = vector.broadcast %118 : vector<8x1xf32> to vector<8x8xf32>
    %120 = arith.mulf %117, %119 : vector<8x8xf32>
    %c0_37 = arith.constant 0 : index
    %c24 = arith.constant 24 : index
    %121 = vector.load %arg9[%c0_37, %c24] : memref<8x128xf32, #tpu.memory_space<vmem>>, vector<8x8xf32>
    tpu.vector_store %arg9[%c0_37, %c24], %120 {strides = array<i32>} : memref<8x128xf32, #tpu.memory_space<vmem>>, vector<8x8xf32>,
    %cst_38 = arith.constant 0.000000e+00 : f32
    %122 = vector.broadcast %cst_38 : f32 to vector<8x96xf32>
    %c0_39 = arith.constant 0 : index
    %c32 = arith.constant 32 : index
    %123 = vector.load %arg9[%c0_39, %c32] : memref<8x128xf32, #tpu.memory_space<vmem>>, vector<8x96xf32>
    tpu.vector_store %arg9[%c0_39, %c32], %122 {strides = array<i32>} : memref<8x128xf32, #tpu.memory_space<vmem>>, vector<8x96xf32>,
    %c0_40 = arith.constant 0 : index
    %c0_41 = arith.constant 0 : index
    %124 = vector.load %arg9[%c0_40, %c0_41] : memref<8x128xf32, #tpu.memory_space<vmem>>, vector<8x128xf32>
    %125 = arith.truncf %124 : vector<8x128xf32> to vector<8x128xbf16>
    %c0_42 = arith.constant 0 : index
    %c0_43 = arith.constant 0 : index
    %126 = vector.load %arg6[%c0_42, %c0_43] : memref<128x128xbf16, #tpu.memory_space<vmem>>, vector<128x128xbf16>
    %cst_44 = arith.constant dense<0.000000e+00> : vector<8x128xf32>
    %127 = tpu.matmul %125, %126, %cst_44 {dimension_numbers = #tpu.dot_dimension_numbers<[1], [0], [0], [1], [0, 0, 1, 1], [], []>} : vector<8x128xbf16>, vector<128x128xbf16>, vector<8x128xf32> -> vector<8x128xf32>
    %c0_45 = arith.constant 0 : index
    %c0_46 = arith.constant 0 : index
    %128 = vector.load %arg7[%c0_45, %c0_46] : memref<1x128xf32, #tpu.memory_space<vmem>>, vector<1x128xf32>
    %129 = vector.broadcast %128 : vector<1x128xf32> to vector<8x128xf32>
    %130 = arith.addf %127, %129 : vector<8x128xf32>
    %131 = arith.addf %1, %130 : vector<8x128xf32>
    %c0_47 = arith.constant 0 : index
    %c0_48 = arith.constant 0 : index
    %c0_49 = arith.constant 0 : index
    %132 = vector.load %arg8[%c0_47, %c0_48, %c0_49] : memref<1x8x128xf32, #tpu.memory_space<vmem>>, vector<1x8x128xf32>
    %133 = vector.shape_cast %132 : vector<1x8x128xf32> to vector<8x128xf32>
    %134 = vector.shape_cast %131 : vector<8x128xf32> to vector<1x8x128xf32>
    tpu.vector_store %arg8[%c0_47, %c0_48, %c0_49], %134 {strides = array<i32>} : memref<1x8x128xf32, #tpu.memory_space<vmem>>, vector<1x8x128xf32>,
    return
  }
  func.func @transform_0(%arg0: i32) -> (i32, i32, i32) {
    %c0_i32 = arith.constant 0 : i32
    %c0_i32_0 = arith.constant 0 : i32
    %c0_i32_1 = arith.constant 0 : i32
    return %arg0, %c0_i32, %c0_i32_0 : i32, i32, i32
  }
  func.func @transform_1(%arg0: i32) -> (i32, i32) {
    %c0_i32 = arith.constant 0 : i32
    %c0_i32_0 = arith.constant 0 : i32
    %c0_i32_1 = arith.constant 0 : i32
    return %c0_i32, %c0_i32_0 : i32, i32
  }
  func.func @transform_2(%arg0: i32) -> (i32, i32) {
    %c0_i32 = arith.constant 0 : i32
    %c0_i32_0 = arith.constant 0 : i32
    %c0_i32_1 = arith.constant 0 : i32
    return %c0_i32, %c0_i32_0 : i32, i32
  }
  func.func @transform_3(%arg0: i32) -> (i32, i32) {
    %c0_i32 = arith.constant 0 : i32
    %c0_i32_0 = arith.constant 0 : i32
    %c0_i32_1 = arith.constant 0 : i32
    return %c0_i32, %c0_i32_0 : i32, i32
  }
  func.func @transform_4(%arg0: i32) -> (i32, i32) {
    %c0_i32 = arith.constant 0 : i32
    %c0_i32_0 = arith.constant 0 : i32
    %c0_i32_1 = arith.constant 0 : i32
    return %c0_i32, %c0_i32_0 : i32, i32
  }
  func.func @transform_5(%arg0: i32) -> (i32, i32) {
    %c0_i32 = arith.constant 0 : i32
    %c0_i32_0 = arith.constant 0 : i32
    %c0_i32_1 = arith.constant 0 : i32
    return %c0_i32, %c0_i32_0 : i32, i32
  }
  func.func @transform_6(%arg0: i32) -> (i32, i32) {
    %c0_i32 = arith.constant 0 : i32
    %c0_i32_0 = arith.constant 0 : i32
    %c0_i32_1 = arith.constant 0 : i32
    return %c0_i32, %c0_i32_0 : i32, i32
  }
  func.func @transform_7(%arg0: i32) -> (i32, i32, i32) {
    %c0_i32 = arith.constant 0 : i32
    %c0_i32_0 = arith.constant 0 : i32
    %c0_i32_1 = arith.constant 0 : i32
    return %arg0, %c0_i32, %c0_i32_0 : i32, i32, i32
  }
}

module attributes {stable_mosaic.version = 11 : i64} {
  func.func @mlp_block_kernel(%arg0: i32, %arg1: i32, %arg2: memref<1x8x128xf32, #tpu.memory_space<vmem>>, %arg3: memref<1x128xf32, #tpu.memory_space<vmem>>, %arg4: memref<1x128xf32, #tpu.memory_space<vmem>>, %arg5: memref<128x128xbf16, #tpu.memory_space<vmem>>, %arg6: memref<1x128xf32, #tpu.memory_space<vmem>>, %arg7: memref<128x128xbf16, #tpu.memory_space<vmem>>, %arg8: memref<1x128xf32, #tpu.memory_space<vmem>>, %arg9: memref<1x8x128xf32, #tpu.memory_space<vmem>>) attributes {dimension_semantics = [#tpu.dimension_semantics<parallel>, #tpu.dimension_semantics<parallel>], iteration_bounds = array<i64: 2, 1>, scalar_prefetch = 0 : i64, scratch_operands = 0 : i64, tpu.core_type = #tpu.core_type<tc>, window_params = [{transform_indices = @transform_0, window_bounds = array<i64: 1, 8, 128>}, {pipeline_mode = #tpu.pipeline_mode<synchronous>, transform_indices = @transform_1, window_bounds = array<i64: 1, 128>}, {pipeline_mode = #tpu.pipeline_mode<synchronous>, transform_indices = @transform_2, window_bounds = array<i64: 1, 128>}, {pipeline_mode = #tpu.pipeline_mode<synchronous>, transform_indices = @transform_3, window_bounds = array<i64: 128, 128>}, {pipeline_mode = #tpu.pipeline_mode<synchronous>, transform_indices = @transform_4, window_bounds = array<i64: 1, 128>}, {pipeline_mode = #tpu.pipeline_mode<synchronous>, transform_indices = @transform_5, window_bounds = array<i64: 128, 128>}, {pipeline_mode = #tpu.pipeline_mode<synchronous>, transform_indices = @transform_6, window_bounds = array<i64: 1, 128>}, {transform_indices = @transform_7, window_bounds = array<i64: 1, 8, 128>}]} {
    %c0 = arith.constant 0 : index
    %c0_0 = arith.constant 0 : index
    %c0_1 = arith.constant 0 : index
    %0 = vector.load %arg2[%c0, %c0_0, %c0_1] : memref<1x8x128xf32, #tpu.memory_space<vmem>>, vector<1x8x128xf32>
    %1 = vector.shape_cast %0 : vector<1x8x128xf32> to vector<8x128xf32>
    %2 = tpu.iota {dimensions = array<i32: 1>} : vector<1x128xi32>
    %c32_i32 = arith.constant 32 : i32
    %3 = vector.broadcast %c32_i32 : i32 to vector<1x128xi32>
    %4 = arith.cmpi slt, %2, %3 : vector<1x128xi32>
    %5 = arith.extui %4 : vector<1x128xi1> to vector<1x128xi32>
    %6 = arith.sitofp %5 : vector<1x128xi32> to vector<1x128xf32>
    %c0_2 = arith.constant 0 : index
    %c0_3 = arith.constant 0 : index
    %7 = vector.load %arg3[%c0_2, %c0_3] : memref<1x128xf32, #tpu.memory_space<vmem>>, vector<1x128xf32>
    %c0_4 = arith.constant 0 : index
    %c0_5 = arith.constant 0 : index
    %8 = vector.load %arg4[%c0_4, %c0_5] : memref<1x128xf32, #tpu.memory_space<vmem>>, vector<1x128xf32>
    %9 = vector.broadcast %6 : vector<1x128xf32> to vector<8x128xf32>
    %10 = arith.mulf %1, %9 : vector<8x128xf32>
    %cst = arith.constant dense<0.000000e+00> : vector<8xf32>
    %11 = vector.multi_reduction <add>, %10, %cst [1] : vector<8x128xf32> to vector<8xf32>
    %12 = vector.shape_cast %11 : vector<8xf32> to vector<8x1xf32>
    %cst_6 = arith.constant 3.125000e-02 : f32
    %13 = vector.broadcast %cst_6 : f32 to vector<8x1xf32>
    %14 = arith.mulf %12, %13 : vector<8x1xf32>
    %15 = vector.broadcast %14 : vector<8x1xf32> to vector<8x128xf32>
    %16 = arith.subf %1, %15 : vector<8x128xf32>
    %17 = vector.broadcast %6 : vector<1x128xf32> to vector<8x128xf32>
    %18 = arith.mulf %16, %17 : vector<8x128xf32>
    %19 = arith.mulf %18, %18 : vector<8x128xf32>
    %cst_7 = arith.constant dense<0.000000e+00> : vector<8xf32>
    %20 = vector.multi_reduction <add>, %19, %cst_7 [1] : vector<8x128xf32> to vector<8xf32>
    %21 = vector.shape_cast %20 : vector<8xf32> to vector<8x1xf32>
    %cst_8 = arith.constant 3.125000e-02 : f32
    %22 = vector.broadcast %cst_8 : f32 to vector<8x1xf32>
    %23 = arith.mulf %21, %22 : vector<8x1xf32>
    %cst_9 = arith.constant 9.99999974E-6 : f32
    %24 = vector.broadcast %cst_9 : f32 to vector<8x1xf32>
    %25 = arith.addf %23, %24 : vector<8x1xf32>
    %26 = math.rsqrt %25 : vector<8x1xf32>
    %27 = vector.broadcast %26 : vector<8x1xf32> to vector<8x128xf32>
    %28 = arith.mulf %18, %27 : vector<8x128xf32>
    %29 = vector.broadcast %7 : vector<1x128xf32> to vector<8x128xf32>
    %30 = arith.mulf %28, %29 : vector<8x128xf32>
    %31 = vector.broadcast %8 : vector<1x128xf32> to vector<8x128xf32>
    %32 = arith.addf %30, %31 : vector<8x128xf32>
    %33 = arith.truncf %32 : vector<8x128xf32> to vector<8x128xbf16>
    %c0_10 = arith.constant 0 : index
    %c0_11 = arith.constant 0 : index
    %34 = vector.load %arg5[%c0_10, %c0_11] : memref<128x128xbf16, #tpu.memory_space<vmem>>, vector<128x128xbf16>
    %cst_12 = arith.constant dense<0.000000e+00> : vector<8x128xf32>
    %35 = tpu.matmul %33, %34, %cst_12 {dimension_numbers = #tpu.dot_dimension_numbers<[1], [0], [0], [1], [0, 0, 1, 1], [], []>} : vector<8x128xbf16>, vector<128x128xbf16>, vector<8x128xf32> -> vector<8x128xf32>
    %c0_13 = arith.constant 0 : index
    %c0_14 = arith.constant 0 : index
    %36 = vector.load %arg6[%c0_13, %c0_14] : memref<1x128xf32, #tpu.memory_space<vmem>>, vector<1x128xf32>
    %37 = vector.broadcast %36 : vector<1x128xf32> to vector<8x128xf32>
    %38 = arith.addf %35, %37 : vector<8x128xf32>
    %cst_15 = arith.constant 4.471500e-02 : f32
    %39 = vector.broadcast %cst_15 : f32 to vector<8x128xf32>
    %40 = arith.mulf %39, %38 : vector<8x128xf32>
    %41 = arith.mulf %40, %38 : vector<8x128xf32>
    %42 = arith.mulf %41, %38 : vector<8x128xf32>
    %43 = arith.addf %38, %42 : vector<8x128xf32>
    %cst_16 = arith.constant 0.797884583 : f32
    %44 = vector.broadcast %cst_16 : f32 to vector<8x128xf32>
    %45 = arith.mulf %44, %43 : vector<8x128xf32>
    %46 = arith.truncf %45 : vector<8x128xf32> to vector<8x128xbf16>
    %47 = math.tanh %46 : vector<8x128xbf16>
    %48 = arith.extf %47 : vector<8x128xbf16> to vector<8x128xf32>
    %cst_17 = arith.constant 5.000000e-01 : f32
    %49 = vector.broadcast %cst_17 : f32 to vector<8x128xf32>
    %50 = arith.mulf %49, %38 : vector<8x128xf32>
    %cst_18 = arith.constant 1.000000e+00 : f32
    %51 = vector.broadcast %cst_18 : f32 to vector<8x128xf32>
    %52 = arith.addf %51, %48 : vector<8x128xf32>
    %53 = arith.mulf %50, %52 : vector<8x128xf32>
    %54 = arith.truncf %53 : vector<8x128xf32> to vector<8x128xbf16>
    %c0_19 = arith.constant 0 : index
    %c0_20 = arith.constant 0 : index
    %55 = vector.load %arg7[%c0_19, %c0_20] : memref<128x128xbf16, #tpu.memory_space<vmem>>, vector<128x128xbf16>
    %cst_21 = arith.constant dense<0.000000e+00> : vector<8x128xf32>
    %56 = tpu.matmul %54, %55, %cst_21 {dimension_numbers = #tpu.dot_dimension_numbers<[1], [0], [0], [1], [0, 0, 1, 1], [], []>} : vector<8x128xbf16>, vector<128x128xbf16>, vector<8x128xf32> -> vector<8x128xf32>
    %c0_22 = arith.constant 0 : index
    %c0_23 = arith.constant 0 : index
    %57 = vector.load %arg8[%c0_22, %c0_23] : memref<1x128xf32, #tpu.memory_space<vmem>>, vector<1x128xf32>
    %58 = vector.broadcast %57 : vector<1x128xf32> to vector<8x128xf32>
    %59 = arith.addf %56, %58 : vector<8x128xf32>
    %60 = arith.addf %1, %59 : vector<8x128xf32>
    %c0_24 = arith.constant 0 : index
    %c0_25 = arith.constant 0 : index
    %c0_26 = arith.constant 0 : index
    %61 = vector.load %arg9[%c0_24, %c0_25, %c0_26] : memref<1x8x128xf32, #tpu.memory_space<vmem>>, vector<1x8x128xf32>
    %62 = vector.shape_cast %61 : vector<1x8x128xf32> to vector<8x128xf32>
    %63 = vector.shape_cast %60 : vector<8x128xf32> to vector<1x8x128xf32>
    tpu.vector_store %arg9[%c0_24, %c0_25, %c0_26], %63 {strides = array<i32>} : memref<1x8x128xf32, #tpu.memory_space<vmem>>, vector<1x8x128xf32>,
    return
  }
  func.func @transform_0(%arg0: i32, %arg1: i32) -> (i32, i32, i32) {
    %c0_i32 = arith.constant 0 : i32
    %c0_i32_0 = arith.constant 0 : i32
    return %arg0, %arg1, %c0_i32 : i32, i32, i32
  }
  func.func @transform_1(%arg0: i32, %arg1: i32) -> (i32, i32) {
    %c0_i32 = arith.constant 0 : i32
    %c0_i32_0 = arith.constant 0 : i32
    %c0_i32_1 = arith.constant 0 : i32
    return %c0_i32, %c0_i32_0 : i32, i32
  }
  func.func @transform_2(%arg0: i32, %arg1: i32) -> (i32, i32) {
    %c0_i32 = arith.constant 0 : i32
    %c0_i32_0 = arith.constant 0 : i32
    %c0_i32_1 = arith.constant 0 : i32
    return %c0_i32, %c0_i32_0 : i32, i32
  }
  func.func @transform_3(%arg0: i32, %arg1: i32) -> (i32, i32) {
    %c0_i32 = arith.constant 0 : i32
    %c0_i32_0 = arith.constant 0 : i32
    %c0_i32_1 = arith.constant 0 : i32
    return %c0_i32, %c0_i32_0 : i32, i32
  }
  func.func @transform_4(%arg0: i32, %arg1: i32) -> (i32, i32) {
    %c0_i32 = arith.constant 0 : i32
    %c0_i32_0 = arith.constant 0 : i32
    %c0_i32_1 = arith.constant 0 : i32
    return %c0_i32, %c0_i32_0 : i32, i32
  }
  func.func @transform_5(%arg0: i32, %arg1: i32) -> (i32, i32) {
    %c0_i32 = arith.constant 0 : i32
    %c0_i32_0 = arith.constant 0 : i32
    %c0_i32_1 = arith.constant 0 : i32
    return %c0_i32, %c0_i32_0 : i32, i32
  }
  func.func @transform_6(%arg0: i32, %arg1: i32) -> (i32, i32) {
    %c0_i32 = arith.constant 0 : i32
    %c0_i32_0 = arith.constant 0 : i32
    %c0_i32_1 = arith.constant 0 : i32
    return %c0_i32, %c0_i32_0 : i32, i32
  }
  func.func @transform_7(%arg0: i32, %arg1: i32) -> (i32, i32, i32) {
    %c0_i32 = arith.constant 0 : i32
    %c0_i32_0 = arith.constant 0 : i32
    return %arg0, %arg1, %c0_i32 : i32, i32, i32
  }
}

</mosaic_0001>

<bundles_post_ra>
// kernel: block_forward.2
= control target key start
LH: loop header
LB: loop body
LE: loop exit
PB: predicated region body
PF: predicated region fallthrough
CT: control target
= control target key end

     0   :  { %12 = vsyncpa [#allocation4], 0  ;;  %s1468_s0 = inlined_call_operand.vmem [shape: f32[2,8,128], index: 0, kind: input, shape index: {}]   ;;  %s1469_s1 = inlined_call_operand.vmem [shape: f32[1,128], index: 1, kind: input, shape index: {}]   ;;  %s1470_s2 = inlined_call_operand.vmem [shape: f32[1,128], index: 2, kind: input, shape index: {}]   ;;  %s1471_s3 = inlined_call_operand.hbm [shape: bf16[128,384], index: 3, kind: input, shape index: {}]   ;;  %s1472_s4 = inlined_call_operand.vmem [shape: f32[1,384], index: 4, kind: input, shape index: {}]   ;;  %s1473_s5 = inlined_call_operand.hbm [shape: bf16[128,128], index: 5, kind: input, shape index: {}]   ;;  %s1474_s6 = inlined_call_operand.vmem [shape: f32[1,128], index: 6, kind: input, shape index: {}]   ;;  %s1475_s7 = inlined_call_operand.vmem [shape: f32[2,8,128], index: 7, kind: output, shape index: {}]  }
   0x1   :  { %13 = vsyncpa [#allocation6], 0  ;;  %s1356_s24 = smov 0  }
   0x2 LB: > { %s219_s27 = sshll.u32 %s1471_s3, 4  ;;  %s982_s28 = sadd.s32 4294967295, %s1300_s24   ;;  %s1300_s24 = sphi %s1356_s24, %s19_s24   ;;  %s220_s27 = int_to_ptr.hbm [resolvable:$true] %s219_s27 }
   0x3   : > { %p984_p0 = scmp.ge.s32.totalorder %s1300_s24, 1  ;;  %p202_p1 = scmp.lt.s32.totalorder %s1300_s24, 3 }
   0x4   : > { %p1179_p2 = scmp.eq.s32.totalorder %s982_s28, 0  ;;  %s1302_s30 = smov [#allocation3]  }
   0x5   : > { %p1367_p3 = pnand %p984_p0, %p202_p1  ;;  %s221_s8 = sshll.u32 %s1302_s30, 4  ;;  %s222_s8 = int_to_ptr.vmem [resolvable:$true] %s221_s8 }
   0x6   : > { %s236_s11 = sshll.u32 %s1473_s5, 4  ;;  %s1303_s12 = smov [#allocation5]   ;;  %s237_s11 = int_to_ptr.hbm [resolvable:$true] %s236_s11 }
   0x7   : > { %p1172_p4 = pneg %p1367_p3  ;;  %s238_s13 = sshll.u32 %s1303_s12, 4  ;;  %s239_s13 = int_to_ptr.vmem [resolvable:$true] %s238_s13 }
   0x8   : > { %s1304_s14 = smov 192   ;;  %s1305_s15 = smov 12  }
   0x9   : > { %p1173_p5 = pnand %p1179_p2, %p1172_p4  ;;  %s1306_s16 = smov 64  }
   0xa   : > { %s1307_s17 = smov 4   ;;  %264 = sbr.rel (%p1367_p3) target bundleno = 1398 (0x576), region = 48 }
   0xb   : > { %1175 = dma.hbm_to_vmem [thread:$0]  (!%p1173_p5), %s220_s27, 3072, %s222_s8, [#allocation4], %s1304_s14, %s1304_s14, %s1305_s15  }
   0xc   : > { %1178 = dma.hbm_to_vmem [thread:$0]  (!%p1173_p5), %s237_s11, 1024, %s239_s13, [#allocation6], %s1306_s16, %s1306_s16, %s1307_s17  }
   0xf   : > { %1291 = dma.done.wait (%p1179_p2), [#allocation4], 3072  }
  0x10   : > { %1293 = vsyncadd (%p1179_p2), [#allocation4], 4294964224 }
  0x11   : > { %1295 = dma.done.wait (%p1179_p2), [#allocation6], 1024  }
  0x12   : > { %1297 = vsyncadd (%p1179_p2), [#allocation6], 4294966272  ;;  %p300_p6 = scmp.lt.s32.totalorder %s982_s28, 1  ;;  %v310_v0 = vlaneseq  ;;  %v1308_v2 = vmov 0.0   ;;  %v1080_v6 = vld [vmem:[#allocation3 + $0xa8] sm:$0xf] }
  0x13   : > { %v1154_v7 = vld [vmem:[#allocation3 + $0xb0] sm:$0xf0]  ;;  %v1153_v8 = vld [vmem:[#allocation3 + $0xac] sm:$0xf]  ;;  %v1082_v10 = vld [vmem:[#allocation3 + $0xb4] sm:$0xf0] }
  0x14   : > { %s1478_s28 = smov (!%p300_p6, %s982_s28), 1  ;;  %v1386_v1 = vand.u32 127, %v310_v0  ;;  %v1081_v9 = vor.u32 %v1154_v7, %v1080_v6  ;;  %v1088_v11 = vld [vmem:[#allocation3 + $0xb0] sm:$0xf]  ;;  %v1155_v12 = vld [vmem:[#allocation3 + $0xb8] sm:$0xf0]  ;;  %v1085_v13 = vor.u32 %v1153_v8, %v1082_v10 }
  0x15   : > { %s991_s18 = sshll.u32 %s1478_s28, 3  ;;  %v1089_v14 = vor.u32 %v1155_v12, %v1088_v11  ;;  %v1068_v20 = vld [vmem:[#allocation3 + $0x90] sm:$0xf]  ;;  %v1151_v21 = vld [vmem:[#allocation3 + $0x98] sm:$0xf0]  ;;  %vm564_vm4 = vcmask 64512  }
  0x16   : > { %vm312_vm0 = vcmp.lt.s32.totalorder %v1386_v1, 32  ;;  %s303_s21 = scalar_lea.vmem %s1468_s0, %s991_s18  ;;  %516 = vmatpush.bf16.msra.mxu0 %v1081_v9  ;;  %529 = vmatpush.bf16.msra.mxu1 %v1085_v13  ;;  %v1150_v22 = vld [vmem:[#allocation3 + $0x94] sm:$0xf]  ;;  %v1069_v23 = vor.u32 %v1151_v21, %v1068_v20  ;;  %v1070_v24 = vld [vmem:[#allocation3 + $0x9c] sm:$0xf0]  ;;  %s1309_s30 = smov 120  }
  0x17   : > { %v993_v3 = vsel %vm312_vm0, 1.0, %v1308_v2  ;;  %v1396_v4 = vld [vmem:[%s303_s21] sm:$0xff]  ;;  %542 = vmatpush.bf16.msra.mxu2 %v1089_v14  ;;  %v1152_v26 = vld [vmem:[#allocation3 + $0xa0] sm:$0xf0]  ;;  %v1073_v27 = vor.u32 %v1150_v22, %v1070_v24  ;;  %v1058_v33 = vld [vmem:[#allocation3 + $0x84] sm:$0xf0]  ;;  %s307_s17 = scalar_lea.vmem %s1475_s7, %s991_s18 }
  0x18   : > { %v317_v5 = vmul.f32 %v993_v3, %v1396_v4  ;;  %v1076_v25 = vld [vmem:[#allocation3 + $0x98] sm:$0xf]  ;;  %v1148_v30 = vld [vmem:[#allocation3 + $0x80] sm:$0xf0]  ;;  %v1147_v31 = vld [vmem:[#allocation3 + $0x7c] sm:$0xf] }
  0x19   : > { %v1077_v28 = vor.u32 %v1152_v26, %v1076_v25  ;;  %v1056_v29 = vld [vmem:[#allocation3 + $0x78] sm:$0xf]  ;;  %v1064_v34 = vld [vmem:[#allocation3 + $0x80] sm:$0xf]  ;;  %v1149_v35 = vld [vmem:[#allocation3 + $0x88] sm:$0xf0]  ;;  %v1061_v36 = vor.u32 %v1147_v31, %v1058_v33 }
  0x1a   : > { %318 = vadd.xlane.f32.xlu0 %v317_v5  ;;  %517 = vmatpush.bf16.msra.mxu0 %v1069_v23  ;;  %v1057_v32 = vor.u32 %v1148_v30, %v1056_v29  ;;  %v1065_v37 = vor.u32 %v1149_v35, %v1064_v34  ;;  %v1044_v38 = vld [vmem:[#allocation3 + $0x60] sm:$0xf]  ;;  %v1145_v39 = vld [vmem:[#allocation3 + $0x68] sm:$0xf0]  ;;  %v1144_v40 = vld [vmem:[#allocation3 + $0x64] sm:$0xf] }
  0x1b   : > { %530 = vmatpush.bf16.msra.mxu1 %v1073_v27  ;;  %543 = vmatpush.bf16.msra.mxu2 %v1077_v28  ;;  %v1045_v41 = vor.u32 %v1145_v39, %v1044_v38  ;;  %v1046_v42 = vld [vmem:[#allocation3 + $0x6c] sm:$0xf0]  ;;  %v1052_v43 = vld [vmem:[#allocation3 + $0x68] sm:$0xf]  ;;  %v1146_v44 = vld [vmem:[#allocation3 + $0x70] sm:$0xf0] }
  0x1c   : > { %v1049_v45 = vor.u32 %v1144_v40, %v1046_v42  ;;  %v1053_v46 = vor.u32 %v1146_v44, %v1052_v43  ;;  %v1032_v47 = vld [vmem:[#allocation3 + $0x48] sm:$0xf]  ;;  %v1142_v48 = vld [vmem:[#allocation3 + $0x50] sm:$0xf0]  ;;  %v1141_v49 = vld [vmem:[#allocation3 + $0x4c] sm:$0xf] }
  0x1d   : > { %v1033_v50 = vor.u32 %v1142_v48, %v1032_v47  ;;  %v1034_v51 = vld [vmem:[#allocation3 + $0x54] sm:$0xf0]  ;;  %v1040_v52 = vld [vmem:[#allocation3 + $0x50] sm:$0xf]  ;;  %v1143_v53 = vld [vmem:[#allocation3 + $0x58] sm:$0xf0] }
  0x1e   : > { %518 = vmatpush.bf16.msra.mxu0 %v1057_v32  ;;  %v1037_v54 = vor.u32 %v1141_v49, %v1034_v51  ;;  %v1041_v55 = vor.u32 %v1143_v53, %v1040_v52  ;;  %v1020_v56 = vld [vmem:[#allocation3 + $0x30] sm:$0xf]  ;;  %v1139_v57 = vld [vmem:[#allocation3 + $0x38] sm:$0xf0]  ;;  %v1138_v58 = vld [vmem:[#allocation3 + $0x34] sm:$0xf] }
  0x1f   : > { %531 = vmatpush.bf16.msra.mxu1 %v1061_v36  ;;  %544 = vmatpush.bf16.msra.mxu2 %v1065_v37  ;;  %v1021_v59 = vor.u32 %v1139_v57, %v1020_v56  ;;  %v1022_v60 = vld [vmem:[#allocation3 + $0x3c] sm:$0xf0]  ;;  %v1028_v61 = vld [vmem:[#allocation3 + $0x38] sm:$0xf]  ;;  %v1140_v62 = vld [vmem:[#allocation3 + $0x40] sm:$0xf0] }
  0x20   : > { %v1025_v63 = vor.u32 %v1138_v58, %v1022_v60  ;;  %v1008_v5 = vld [vmem:[#allocation3 + $0x18] sm:$0xf]  ;;  %v1136_v6 = vld [vmem:[#allocation3 + $0x20] sm:$0xf0]  ;;  %v1135_v7 = vld [vmem:[#allocation3 + $0x1c] sm:$0xf] }
  0x21   : > { %v1009_v8 = vor.u32 %v1136_v6, %v1008_v5  ;;  %v1010_v9 = vld [vmem:[#allocation3 + $0x24] sm:$0xf0]  ;;  %v1016_v10 = vld [vmem:[#allocation3 + $0x20] sm:$0xf]  ;;  %v1137_v11 = vld [vmem:[#allocation3 + $0x28] sm:$0xf0] }
  0x22   : > { %519 = vmatpush.bf16.msra.mxu0 %v1045_v41  ;;  %v1013_v12 = vor.u32 %v1135_v7, %v1010_v9  ;;  %v1017_v13 = vor.u32 %v1137_v11, %v1016_v10  ;;  %v996_v14 = vld [vmem:[#allocation3] sm:$0xf]  ;;  %v1004_v20 = vld [vmem:[#allocation3 + $0x8] sm:$0xf]  ;;  %v1134_v21 = vld [vmem:[#allocation3 + $0x10] sm:$0xf0] }
  0x23   : > { %532 = vmatpush.bf16.msra.mxu1 %v1049_v45  ;;  %545 = vmatpush.bf16.msra.mxu2 %v1053_v46  ;;  %v1005_v23 = vor.u32 %v1134_v21, %v1004_v20  ;;  %v1205_v33 = vld [vmem:[%s1469_s1] ss:$0 sm:$0xff]  ;;  %s1310_s8 = smov 104   ;;  %vm600_vm5 = vcmask 1043456   ;;  %s1311_s9 = smov 112   ;;  %v558_v9 = vshrl.u32 %v310_v0, 7 }
  0x24   : > { %v1206_v36 = vld [vmem:[%s1470_s2] ss:$0 sm:$0xff]  ;;  %v1312_v10 = vmov -1e+30   ;;  %s1313_s10 = smov 16   ;;  %s1314_s11 = smov 8  }
  0x25   : > { %v380_v40 = vld [vmem:[%s1472_s4] sm:$0x7]  ;;  %vm559_vm6 = vcmp.le.s32.totalorder %v1386_v1, %v558_v9  ;;  %s1315_s12 = smov 24   ;;  %vm688_vm7 = vcmask 130112   ;;  %vm753_vm8 = vcmask 195712   ;;  %vm818_vm9 = vcmask 261312  }
  0x26   : > { %520 = vmatpush.bf16.msra.mxu0 %v1033_v50  ;;  %v382_v41 = vperm.slane %v380_v40, 0  ;;  %v383_v42 = vperm.slane %v380_v40, 1  ;;  %v384_v47 = vperm.slane %v380_v40, 2  ;;  %v560_v11 = vsel %vm559_vm6, 0.0, %v1312_v10 }
  0x27   : > { %533 = vmatpush.bf16.msra.mxu1 %v1037_v54  ;;  %546 = vmatpush.bf16.msra.mxu2 %v1041_v55  ;;  %vm820_vm10 = vcmask 1047808  }
  0x2a   : > { %521 = vmatpush.bf16.msra.mxu0 %v1021_v59 }
  0x2b   : > { %534 = vmatpush.bf16.msra.mxu1 %v1025_v63 }
  0x2e   : > { %522 = vmatpush.bf16.msra.mxu0 %v1009_v8 }
  0x2f   : > { %535 = vmatpush.bf16.msra.mxu1 %v1013_v12 }
  0x8d   : > { %v319_v15 = vpop.xlane.xlu0 %318 }
  0x8e   : > { %v320_v16 = vmul.f32 0.03125, %v319_v15  ;;  %v1133_v15 = vld [vmem:[#allocation3 + $0x8] sm:$0xf0] }
  0x90   : > { %v321_v17 = vsub.f32 %v1396_v4, %v320_v16  ;;  %v1132_v16 = vld [vmem:[#allocation3 + $0x4] sm:$0xf] }
  0x92   : > { %v1400_v18 = vmul.f32 %v993_v3, %v321_v17  ;;  %v1029_v3 = vor.u32 %v1140_v62, %v1028_v61  ;;  %v997_v17 = vor.u32 %v1133_v15, %v996_v14 }
  0x94   : > { %v323_v19 = vmul.f32 %v1400_v18, %v1400_v18  ;;  %547 = vmatpush.bf16.msra.mxu2 %v1029_v3  ;;  %523 = vmatpush.bf16.msra.mxu0 %v997_v17 }
  0x96   : > { %324 = vadd.xlane.f32.xlu0 %v323_v19  ;;  %v998_v19 = vld [vmem:[#allocation3 + $0xc] sm:$0xf0] }
  0x97   : > { %v1001_v22 = vor.u32 %v1132_v16, %v998_v19 }
  0x98   : > { %548 = vmatpush.bf16.msra.mxu2 %v1017_v13 }
  0x99   : > { %536 = vmatpush.bf16.msra.mxu1 %v1001_v22 }
  0x9c   : > { %549 = vmatpush.bf16.msra.mxu2 %v1005_v23 }
 0x109   : > { %v325_v24 = vpop.xlane.xlu0 %324 }
 0x10a   : > { %v326_v25 = vmul.f32 0.03125, %v325_v24 }
 0x10c   : > { %v327_v26 = vadd.f32 1e-05, %v326_v25 }
 0x10e   : > { %1208 = vrsqrt.f32 %v327_v26  ;;  %vm334_vm2 = vweird.f32 %v327_v26 }
 0x114   : > { %v1209_v27 = vpop.eup %1208 }
 0x115   : > { %v329_v28 = vmul.f32 %v1209_v27, %v327_v26  ;;  %vm335_vm1 = vweird.f32 %v1209_v27 }
 0x116   : > { %vm336_vm3 = vmor %vm334_vm2, %vm335_vm1 }
 0x117   : > { %v330_v29 = vmul.f32 %v1209_v27, %v329_v28 }
 0x119   : > { %v331_v30 = vmul.f32 0.5, %v330_v29 }
 0x11b   : > { %v332_v31 = vsub.f32 1.5, %v331_v30 }
 0x11d   : > { %v333_v32 = vmul.f32 %v1209_v27, %v332_v31 }
 0x11f   : > { %v337_v34 = vsel %vm336_vm3, %v1209_v27, %v333_v32 }
 0x120   : > { %v338_v35 = vmul.f32 %v337_v34, %v1400_v18 }
 0x122   : > { %v342_v37 = vmul.f32 %v1205_v33, %v338_v35 }
 0x124   : > { %v346_v38 = vadd.f32 %v1206_v36, %v342_v37 }
 0x126   : > { %v347_v39 = vpack.c.bf16 %v346_v38, %v346_v38 }
 0x128   : > { %524 = vmatmul.bf16.vlgmr.msra.gmra.mxu0 %v347_v39  ;;  %537 = vmatmul.bf16.vlgmr.msra.gmra.mxu1 %v347_v39 }
 0x129   : > { %550 = vmatmul.bf16.vlgmr.msra.gmra.mxu2 %v347_v39 }
 0x1a5   : > { %v525_v43 = vpop.f32.mrf.mxu0  ;;  %v538_v44 = vpop.f32.mrf.mxu1 }
 0x1a6   : > { %v526_v45 = vadd.f32 %v525_v43, %v382_v41  ;;  %v539_v18 = vadd.f32 %v538_v44, %v383_v42 }
 0x1a8   : > { %v555_v46 = vpack.c.bf16 %v539_v18, %v526_v45 }
 0x1aa   : > { %v562_v48 = vunpack.c.h.b16 %v555_v46  ;;  %v620_v49 = vunpack.c.l.b16 %v555_v46 }
 0x1ac   : > { %v551_v50 = vpop.f32.mrf.mxu2  ;;  %v621_v51 = vpack.c.b16 %v620_v49, %v620_v49  ;;  %v563_v52 = vpack.c.b16 %v562_v48, %v562_v48 }
 0x1ad   : > { %v552_v53 = vadd.f32 %v551_v50, %v384_v47  ;;  %v527_v54 = vpop.f32.mrf.mxu0  ;;  %v540_v55 = vpop.f32.mrf.mxu1 }
 0x1ae   : > { %622 = vrot.lane.b32.xlu2 %v621_v51, %s1309_s30  ;;  %757 = vrot.lane.b32.xlu0 %v563_v52, %s1310_s8  ;;  %v569_v56 = vsel %vm564_vm4, %v563_v52, 0 }
 0x1af   : > { %v556_v57 = vpack.c.bf16 %v552_v53, %v552_v53  ;;  %578 = vmatpush.bf16.xpose.msra.mxu3 %v569_v56 }
 0x1b1   : > { %v659_v58 = vunpack.c.l.b16 %v556_v57  ;;  %v602_v59 = vsel %vm600_vm5, %v556_v57, 0 }
 0x1b3   : > { %v1418_v60 = vpack.c.b16 %v659_v58, %v659_v58 }
 0x1b4   : > { %v553_v61 = vpop.f32.mrf.mxu2 }
 0x1b6   : > { %661 = vrot.lane.b32.xlu0 %v1418_v60, %s1309_s30  ;;  %692 = vrot.lane.b32.xlu2 %v563_v52, %s1311_s9 }
 0x1b7   : > { %611 = vmatpush.bf16.msrb.mxu3 %v602_v59 }
 0x1b8   : > { %1090 = vmatmul.msk.bf16.vlgmr.msra.gmra.mxu3 %vm564_vm4, %v555_v46 }
 0x1be   : > { %690 = vrot.lane.b32.xlu2 %v621_v51, %s1311_s9 }
 0x1c6   : > { %755 = vrot.lane.b32.xlu2 %v621_v51, %s1310_s8 }
 0x208   : > { %v623_v62 = vpop.permute.xlu2 %622 }
 0x210   : > { %v693_v63 = vpop.permute.xlu2 %692 }
 0x211   : > { %v698_v3 = vsel %vm564_vm4, %v693_v63, 0 }
 0x212   : > { %707 = vmatpush.bf16.xpose.msrb.mxu2 %v698_v3 }
 0x218   : > { %v691_v5 = vpop.permute.xlu2 %690 }
 0x219   : > { %1094 = vmatmul.msk.bf16.vlgmr.msrb.gmra.mxu2 %vm564_vm4, %v691_v5 }
 0x220   : > { %v758_v6 = vpop.permute.xlu0 %757  ;;  %v756_v30 = vpop.permute.xlu2 %755 }
 0x221   : > { %v763_v28 = vsel %vm564_vm4, %v758_v6, 0 }
 0x228   : > { %v662_v7 = vpop.permute.xlu0 %661 }
 0x229   : > { %v667_v8 = vsel %vm600_vm5, %v662_v7, 0 }
 0x22a   : > { %676 = vmatpush.bf16.msrb.mxu0 %v667_v8 }
 0x23b   : > { %v580_v12 = vpop.f32.mrf.mxu3 }
 0x23c   : > { %v581_v13 = vadd.f32 %v580_v12, %v560_v11 }
 0x23e   : > { %v584_v14 = vsel %vm564_vm4, %v581_v13, -inf }
 0x23f   : > { %585 = vmax.xlane.f32.xlu1 %v584_v14 }
 0x243   : > { %v582_v15 = vpop.f32.mrf.mxu3 }
 0x258   : > { %624 = vrot.lane.b32.xlu1 %v563_v52, %s1309_s30 }
 0x29c   : > { %v709_v16 = vpop.f32.mrf.mxu2 }
 0x29d   : > { %v710_v17 = vadd.f32 %v709_v16, %v560_v11 }
 0x29f   : > { %v713_v19 = vsel %vm564_vm4, %v710_v17, -inf }
 0x2a0   : > { %714 = vmax.xlane.f32.xlu1 %v713_v19 }
 0x2a4   : > { %v711_v20 = vpop.f32.mrf.mxu2 }
 0x2b2   : > { %v586_v21 = vpop.xlane.xlu1 %585 }
 0x2b3   : > { %v587_v0 = vsub.f32 %v581_v13, %v586_v21 }
 0x2b5   : > { %v588_v22 = vpack.c.bf16 %v587_v0, %v587_v0 }
 0x2b7   : > { %v589_v1 = vunpack.c.l.bf16 %v588_v22 }
 0x2b9   : > { %v590_v23 = vmul.f32 1.442695, %v589_v1  ;;  %791 = vrot.lane.b32.xlu1 %v1418_v60, %s1310_s8 }
 0x2bb   : > { %1210 = vpow2.f32 %v590_v23 }
 0x2c1   : > { %v1211_v24 = vpop.eup %1210 }
 0x2c2   : > { %v592_v25 = vpack.c.bf16 %v1211_v24, %v1211_v24 }
 0x2c4   : > { %1091 = vmatmul.msk.bf16.vlgmr.msrb.gmra.mxu3 %vm564_vm4, %v592_v25  ;;  %v593_v29 = vunpack.c.l.bf16 %v592_v25 }
 0x2c6   : > { %v594_v31 = vsel %vm564_vm4, %v593_v29, 0.0  ;;  %v1163_v29 = vld [vmem:[#allocation5 + $0x38] sm:$0xff] }
 0x2c7   : > { %892 = vmatpush.bf16.msrb.mxu1 %v1163_v29 }
 0x2ca   : > { %v625_v26 = vpop.permute.xlu1 %624 }
 0x2cb   : > { %v630_v27 = vsel %vm564_vm4, %v625_v26, 0 }
 0x2cc   : > { %639 = vmatpush.bf16.xpose.msra.mxu3 %v630_v27 }
 0x2d4   : > { %772 = vmatpush.bf16.xpose.msrb.mxu3 %v763_v28 }
 0x2d5   : > { %1092 = vmatmul.msk.bf16.vlgmr.msra.gmra.mxu3 %vm564_vm4, %v623_v62 }
 0x2e3   : > { %595 = vadd.xlane.f32.xlu1 %v594_v31  ;;  %v1161_v31 = vld [vmem:[#allocation5 + $0x28] sm:$0xff] }
 0x2e5   : > { %1096 = vmatmul.msk.bf16.vlgmr.msrb.gmra.mxu3 %vm564_vm4, %v756_v30  ;;  %v1162_v30 = vld [vmem:[#allocation5 + $0x30] sm:$0xff] }
 0x2e6   : > { %893 = vmatpush.bf16.msrb.mxu1 %v1162_v30 }
 0x2ea   : > { %894 = vmatpush.bf16.msrb.mxu1 %v1161_v31 }
 0x313   : > { %v715_v32 = vpop.xlane.xlu1 %714 }
 0x314   : > { %v716_v37 = vsub.f32 %v710_v17, %v715_v32  ;;  %v1160_v32 = vld [vmem:[#allocation5 + $0x20] sm:$0xff] }
 0x315   : > { %895 = vmatpush.bf16.msrb.mxu1 %v1160_v32 }
 0x316   : > { %v717_v38 = vpack.c.bf16 %v716_v37, %v716_v37 }
 0x318   : > { %v718_v42 = vunpack.c.l.bf16 %v717_v38 }
 0x31a   : > { %v719_v44 = vmul.f32 1.442695, %v718_v42  ;;  %v1207_v42 = vld [vmem:[%s1474_s6] ss:$0 sm:$0xff] }
 0x32b   : > { %v792_v33 = vpop.permute.xlu1 %791 }
 0x32c   : > { %v797_v34 = vsel %vm600_vm5, %v792_v33, 0  ;;  %v1159_v33 = vld [vmem:[#allocation5 + $0x18] sm:$0xff] }
 0x32d   : > { %806 = vmatpush.bf16.msra.mxu0 %v797_v34  ;;  %896 = vmatpush.bf16.msrb.mxu1 %v1159_v33  ;;  %v1158_v34 = vld [vmem:[#allocation5 + $0x10] sm:$0xff] }
 0x331   : > { %897 = vmatpush.bf16.msrb.mxu1 %v1158_v34 }
 0x347   : > { %v613_v35 = vpop.f32.mrf.mxu3 }
 0x34f   : > { %v615_v36 = vpop.f32.mrf.mxu3 }
 0x350   : > { %v1156_v36 = vld [vmem:[#allocation5] sm:$0xff] }
 0x356   : > { %v596_v40 = vpop.xlane.xlu1 %595 }
 0x357   : > { %1212 = vrcp.f32 %v596_v40 }
 0x358   : > { %v641_v39 = vpop.f32.mrf.mxu3  ;;  %1214 = vpow2.f32 %v719_v44 }
 0x359   : > { %v642_v41 = vadd.f32 %v641_v39, %v560_v11 }
 0x35b   : > { %v645_v43 = vsel %vm564_vm4, %v642_v41, -inf }
 0x35c   : > { %646 = vmax.xlane.f32.xlu2 %v645_v43 }
 0x35d   : > { %v1213_v45 = vpop.eup %1212 }
 0x35e   : > { %v618_v18 = vmul.f32 %v1213_v45, %v613_v35  ;;  %v1215_v47 = vpop.eup %1214  ;;  %v1157_v35 = vld [vmem:[#allocation5 + $0x8] sm:$0xff] }
 0x35f   : > { %v721_v50 = vpack.c.bf16 %v1215_v47, %v1215_v47  ;;  %898 = vmatpush.bf16.msrb.mxu1 %v1157_v35 }
 0x360   : > { %v643_v46 = vpop.f32.mrf.mxu3  ;;  %619 = vst.msk [vmem:[#allocation2] sm:$0xff] %vm564_vm4, %v618_v18 }
 0x361   : > { %v722_v52 = vunpack.c.l.bf16 %v721_v50 }
 0x363   : > { %v723_v54 = vsel %vm564_vm4, %v722_v52, 0.0  ;;  %899 = vmatpush.bf16.msrb.mxu1 %v1156_v36 }
 0x368   : > { %v774_v48 = vpop.f32.mrf.mxu3 }
 0x369   : > { %v775_v49 = vadd.f32 %v774_v48, %v560_v11 }
 0x36b   : > { %v778_v51 = vsel %vm564_vm4, %v775_v49, -inf }
 0x36c   : > { %779 = vmax.xlane.f32.xlu0 %v778_v51 }
 0x370   : > { %v776_v53 = vpop.f32.mrf.mxu3 }
 0x374   : > { %726 = vrot.lane.b32.xlu2 %v1418_v60, %s1311_s9  ;;  %724 = vadd.xlane.f32.xlu0 %v723_v54 }
 0x3cf   : > { %v647_v55 = vpop.xlane.xlu2 %646 }
 0x3d0   : > { %v648_v56 = vsub.f32 %v642_v41, %v647_v55 }
 0x3d2   : > { %v649_v57 = vpack.c.bf16 %v648_v56, %v648_v56 }
 0x3d4   : > { %v650_v58 = vunpack.c.l.bf16 %v649_v57 }
 0x3d6   : > { %v651_v59 = vmul.f32 1.442695, %v650_v58 }
 0x3d7   : > { %v727_v61 = vpop.permute.xlu2 %726 }
 0x3d8   : > { %1216 = vpow2.f32 %v651_v59  ;;  %v732_v62 = vsel %vm600_vm5, %v727_v61, 0 }
 0x3d9   : > { %741 = vmatpush.bf16.msra.mxu2 %v732_v62 }
 0x3dc   : > { %1095 = vmatmul.msk.bf16.vlgmr.msra.gmra.mxu2 %vm564_vm4, %v721_v50 }
 0x3de   : > { %v1217_v63 = vpop.eup %1216 }
 0x3df   : > { %v653_v3 = vpack.c.bf16 %v1217_v63, %v1217_v63  ;;  %v780_v5 = vpop.xlane.xlu0 %779 }
 0x3e0   : > { %v781_v6 = vsub.f32 %v775_v49, %v780_v5 }
 0x3e1   : > { %1093 = vmatmul.msk.bf16.vlgmr.msrb.gmra.mxu0 %vm564_vm4, %v653_v3  ;;  %v654_v60 = vunpack.c.l.bf16 %v653_v3 }
 0x3e2   : > { %v782_v7 = vpack.c.bf16 %v781_v6, %v781_v6 }
 0x3e3   : > { %v655_v8 = vsel %vm564_vm4, %v654_v60, 0.0 }
 0x3e4   : > { %v783_v9 = vunpack.c.l.bf16 %v782_v7  ;;  %656 = vadd.xlane.f32.xlu0 %v655_v8 }
 0x3e6   : > { %v784_v10 = vmul.f32 1.442695, %v783_v9 }
 0x3e7   : > { %v725_v15 = vpop.xlane.xlu0 %724 }
 0x3e8   : > { %1218 = vpow2.f32 %v784_v10 }
 0x3e9   : > { %1220 = vrcp.f32 %v725_v15 }
 0x3ee   : > { %v1219_v11 = vpop.eup %1218 }
 0x3ef   : > { %v786_v12 = vpack.c.bf16 %v1219_v11, %v1219_v11  ;;  %v1221_v19 = vpop.eup %1220 }
 0x3f1   : > { %1097 = vmatmul.msk.bf16.vlgmr.msra.gmra.mxu0 %vm564_vm4, %v786_v12  ;;  %v787_v13 = vunpack.c.l.bf16 %v786_v12 }
 0x3f3   : > { %v788_v14 = vsel %vm564_vm4, %v787_v13, 0.0 }
 0x3f4   : > { %789 = vadd.xlane.f32.xlu2 %v788_v14 }
 0x457   : > { %v657_v16 = vpop.xlane.xlu0 %656 }
 0x458   : > { %1222 = vrcp.f32 %v657_v16 }
 0x45e   : > { %v678_v17 = vpop.f32.mrf.mxu0  ;;  %v1223_v0 = vpop.eup %1222 }
 0x45f   : > { %v743_v20 = vpop.f32.mrf.mxu2  ;;  %v683_v24 = vmul.f32 %v1223_v0, %v678_v17 }
 0x460   : > { %v748_v21 = vmul.f32 %v1221_v19, %v743_v20 }
 0x462   : > { %750 = vrot.lane.b32.xlu0 %v748_v21, %s1313_s10 }
 0x466   : > { %v680_v22 = vpop.f32.mrf.mxu0 }
 0x467   : > { %v790_v1 = vpop.xlane.xlu2 %789  ;;  %v745_v23 = vpop.f32.mrf.mxu2 }
 0x468   : > { %1224 = vrcp.f32 %v790_v1 }
 0x46a   : > { %685 = vrot.lane.b32.xlu0 %v683_v24, %s1314_s11 }
 0x46e   : > { %v1225_v25 = vpop.eup %1224  ;;  %v808_v26 = vpop.f32.mrf.mxu0 }
 0x46f   : > { %v813_v27 = vmul.f32 %v1225_v25, %v808_v26 }
 0x472   : > { %815 = vrot.lane.b32.xlu0 %v813_v27, %s1315_s12 }
 0x476   : > { %v810_v28 = vpop.f32.mrf.mxu0 }
 0x4d4   : > { %v751_v37 = vpop.permute.xlu0 %750 }
 0x4dc   : > { %v686_v38 = vpop.permute.xlu0 %685 }
 0x4dd   : > { %689 = vst.msk [vmem:[#allocation2] sm:$0xff] %vm688_vm7, %v686_v38 }
 0x4de   : > { %754 = vst.msk [vmem:[#allocation2] sm:$0xff] %vm753_vm8, %v751_v37 }
 0x4e4   : > { %v816_v39 = vpop.permute.xlu0 %815 }
 0x4e5   : > { %819 = vst.msk [vmem:[#allocation2] sm:$0xff] %vm818_vm9, %v816_v39 }
 0x4e6   : > { %821 = vst.msk [vmem:[#allocation2] sm:$0xff] %vm820_vm10, %v1308_v2 }
 0x4ed   : > { %v822_v40 = vld [vmem:[#allocation2] sm:$0xff] }
 0x4ee   : > { %v823_v41 = vpack.c.bf16 %v822_v40, %v822_v40 }
 0x4f0   : > { %900 = vmatmul.bf16.vlgmr.msrb.gmra.mxu1 %v823_v41 }
 0x56d   : > { %v901_v43 = vpop.f32.mrf.mxu1 }
 0x56e   : > { %v902_v44 = vadd.f32 %v1207_v42, %v901_v43 }
 0x570   : > { %v905_v45 = vadd.f32 %v902_v44, %v1396_v4 }
 0x572   : > { %906 = vst [vmem:[%s307_s17] sm:$0xff] %v905_v45 }
 0x575   : > { %v903_v18 = vpop.f32.mrf.mxu1 }
 0x576 PF: > { %s19_s24 = sadd.s32 1, %s1300_s24  }
 0x577   : > { %p16_p7 = scmp.ge.s32.totalorder %s19_s24, 4  }
 0x579   :  { %18 = sbr.rel (!%p16_p7) target bundleno = 2 (0x2), region = 87 }
 0x57e   :  { %926 = vsyncpa [#allocation4], 1 }
 0x57f   :  { %928 = vsyncpa [#allocation4 + $0x1], 1 }
 0x580   :  { %929 = vsyncpa [#allocation6], 1 }

// kernel: block_forward.3
= control target key start
LH: loop header
LB: loop body
LE: loop exit
PB: predicated region body
PF: predicated region fallthrough
CT: control target
= control target key end

     0   :  { %12 = vsyncpa [#allocation3], 0  ;;  %s1178_s0 = inlined_call_operand.vmem [shape: f32[2,8,128], index: 0, kind: input, shape index: {}]   ;;  %s1179_s1 = inlined_call_operand.vmem [shape: f32[1,128], index: 1, kind: input, shape index: {}]   ;;  %s1180_s2 = inlined_call_operand.vmem [shape: f32[1,128], index: 2, kind: input, shape index: {}]   ;;  %s1181_s3 = inlined_call_operand.hbm [shape: bf16[128,128], index: 3, kind: input, shape index: {}]   ;;  %s1182_s4 = inlined_call_operand.vmem [shape: f32[1,128], index: 4, kind: input, shape index: {}]   ;;  %s1183_s5 = inlined_call_operand.hbm [shape: bf16[128,128], index: 5, kind: input, shape index: {}]   ;;  %s1184_s6 = inlined_call_operand.vmem [shape: f32[1,128], index: 6, kind: input, shape index: {}]   ;;  %s1185_s7 = inlined_call_operand.hbm [shape: f32[2,8,128], index: 7, kind: output, shape index: {}]  }
   0x1   :  { %13 = vsyncpa [#allocation6], 0 }
   0x2   :  { %14 = vsyncpa [#allocation4], 0 }
   0x3   :  { %16 = vsyncpa [#allocation4 + $0x1], 0  ;;  %s1036_s24 = smov 0   ;;  %s1038_s25 = smov 0  }
   0x4   :  { %s1040_s26 = smov 0   ;;  %s1042_s27 = smov 0  }
   0x5   :  { %s1044_s28 = smov 0   ;;  %s1046_s29 = smov 0  }
   0x6 LB: > { %s660_s30 = sadd.s32 4294967295, %s989_s29   ;;  %s661_s8 = sadd.s32 4294967294, %s989_s29   ;;  %s989_s29 = sphi %s1046_s29, %s22_s29   ;;  %s985_s28 = sphi %s1044_s28, %s1194_s28   ;;  %s981_s27 = sphi %s1042_s27, %s1193_s27   ;;  %s977_s26 = sphi %s1040_s26, %s1192_s26   ;;  %s973_s25 = sphi %s1038_s25, %s1191_s25   ;;  %s969_s24 = sphi %s1036_s24, %s1190_s24  }
   0x7   : > { %s34_s9 = sadd.s32 1, %s985_s28  ;;  %s197_s10 = sadd.s32 1, %s977_s26 }
   0x8   : > { %p36_p0 = scmp.ge.s32.totalorder %s34_s9, 2  ;;  %p207_p1 = scmp.ne.s32.totalorder %s977_s26, %s973_s25 }
   0x9   : > { %p208_p2 = scmp.eq.s32.totalorder %s660_s30, 1  ;;  %p213_p3 = scmp.ne.s32.totalorder %s973_s25, %s969_s24 }
   0xa   : > { %s1196_s9 = smov (%p36_p0, %s34_s9), 0  ;;  %p214_p5 = scmp.eq.s32.totalorder %s661_s8, 1 }
   0xb   : > { %p1076_p4 = por %p208_p2, %p207_p1  ;;  %s192_s12 = ssub.s32 %s985_s28, %s1196_s9 }
   0xc   : > { %p662_p6 = scmp.ge.s32.totalorder %s989_s29, 1  ;;  %p195_p7 = scmp.eq.s32.totalorder %s192_s12, 0 }
   0xd   : > { %p1083_p8 = por %p214_p5, %p213_p3  ;;  %p221_p9 = scmp.lt.s32.totalorder %s989_s29, 3 }
   0xe   : > { %s1089_s14 = scalar_select %p195_p7, %s977_s26, %s197_s10  }
   0xf   : > { %p1091_p10 = pnand %p662_p6, %p221_p9  ;;  %p1095_p11 = scmp.eq.s32.totalorder %s660_s30, 0 }
  0x10   : > { %s238_s19 = sshll.u32 %s1181_s3, 4  ;;  %s991_s20 = smov [#allocation2]   ;;  %s239_s19 = int_to_ptr.hbm [resolvable:$true] %s238_s19 }
  0x11   : > { %p766_p12 = pneg %p1091_p10  ;;  %s240_s21 = sshll.u32 %s991_s20, 4  ;;  %s241_s21 = int_to_ptr.vmem [resolvable:$true] %s240_s21 }
  0x12   : > { %s255_s30 = sshll.u32 %s1183_s5, 4  ;;  %s992_s8 = smov 64   ;;  %s256_s30 = int_to_ptr.hbm [resolvable:$true] %s255_s30 }
  0x13   : > { %p767_p13 = pnand %p1095_p11, %p766_p12  ;;  %s993_s10 = smov 4  }
  0x14   : > { %s994_s12 = smov [#allocation5]   ;;  %286 = sbr.rel (%p1091_p10) target bundleno = 600 (0x258), region = 48 }
  0x15   : > { %769 = dma.hbm_to_vmem [thread:$0]  (!%p767_p13), %s239_s19, 1024, %s241_s21, [#allocation3], %s992_s8, %s992_s8, %s993_s10  }
  0x16   : > { %s257_s17 = sshll.u32 %s994_s12, 4  ;;  %s258_s17 = int_to_ptr.vmem [resolvable:$true] %s257_s17 }
  0x17   : > { %772 = dma.hbm_to_vmem [thread:$0]  (!%p767_p13), %s256_s30, 1024, %s258_s17, [#allocation6], %s992_s8, %s992_s8, %s993_s10  }
  0x19   : > { %956 = dma.done.wait (%p1095_p11), [#allocation3], 1024  }
  0x1a   : > { %958 = vsyncadd (%p1095_p11), [#allocation3], 4294966272 }
  0x1b   : > { %960 = dma.done.wait (%p1095_p11), [#allocation6], 1024  }
  0x1c   : > { %962 = vsyncadd (%p1095_p11), [#allocation6], 4294966272  ;;  %p326_p0 = scmp.lt.s32.totalorder %s981_s27, 1  ;;  %v334_v0 = vlaneseq  ;;  %v995_v2 = vmov 0.0   ;;  %v747_v6 = vld [vmem:[#allocation2 + $0x38] sm:$0xff]  ;;  %v746_v12 = vld [vmem:[#allocation2 + $0x30] sm:$0xff] }
  0x1d   : > { %440 = vmatpush.bf16.msra.mxu0 %v747_v6  ;;  %v745_v13 = vld [vmem:[#allocation2 + $0x28] sm:$0xff]  ;;  %v744_v14 = vld [vmem:[#allocation2 + $0x20] sm:$0xff]  ;;  %v743_v15 = vld [vmem:[#allocation2 + $0x18] sm:$0xff]  ;;  %s323_s12 = sand.u32 1, %s973_s25  }
  0x1e   : > { %s327_s18 = scalar_select %p326_p0, %s981_s27, 1  ;;  %v335_v1 = vand.u32 127, %v334_v0  ;;  %v742_v16 = vld [vmem:[#allocation2 + $0x10] sm:$0xff]  ;;  %v741_v17 = vld [vmem:[#allocation2 + $0x8] sm:$0xff]  ;;  %v740_v18 = vld [vmem:[#allocation2] sm:$0xff] }
  0x1f   : > { %v835_v28 = vld [vmem:[%s1179_s1] ss:$0 sm:$0xff]  ;;  %v755_v35 = vld [vmem:[#allocation5 + $0x38] sm:$0xff]  ;;  %v754_v36 = vld [vmem:[#allocation5 + $0x30] sm:$0xff]  ;;  %s669_s17 = sshll.u32 %s323_s12, 3 }
  0x20   : > { %s670_s15 = sshll.u32 %s327_s18, 3  ;;  %vm336_vm0 = vcmp.lt.s32.totalorder %v335_v1, 32  ;;  %v836_v31 = vld [vmem:[%s1180_s2] ss:$0 sm:$0xff]  ;;  %535 = vmatpush.bf16.msra.mxu1 %v755_v35  ;;  %v753_v37 = vld [vmem:[#allocation5 + $0x28] sm:$0xff]  ;;  %v751_v39 = vld [vmem:[#allocation5 + $0x18] sm:$0xff] }
  0x21   : > { %s332_s21 = scalar_lea.vmem %s1178_s0, %s670_s15  ;;  %v671_v3 = vsel %vm336_vm0, 1.0, %v995_v2  ;;  %441 = vmatpush.bf16.msra.mxu0 %v746_v12  ;;  %v752_v38 = vld [vmem:[#allocation5 + $0x20] sm:$0xff]  ;;  %v750_v40 = vld [vmem:[#allocation5 + $0x10] sm:$0xff]  ;;  %v749_v41 = vld [vmem:[#allocation5 + $0x8] sm:$0xff]  ;;  %s737_s18 = sshll.u32 %s981_s27, 3 }
  0x22   : > { %v1124_v4 = vld [vmem:[%s332_s21] sm:$0xff]  ;;  %s562_s16 = scalar_lea.hbm %s1185_s7, %s737_s18  ;;  %s325_s22 = scalar_lea.vmem [#allocation7], %s669_s17 }
  0x23   : > { %v341_v5 = vmul.f32 %v671_v3, %v1124_v4  ;;  %v748_v42 = vld [vmem:[#allocation5] sm:$0xff]  ;;  %s564_s23 = sshll.u32 %s325_s22, 4  ;;  %s566_s30 = sshll.u32 %s562_s16, 4  ;;  %s565_s23 = int_to_ptr.vmem [resolvable:$true] %s564_s23  ;;  %s567_s30 = int_to_ptr.hbm [resolvable:$true] %s566_s30 }
  0x24   : > { %536 = vmatpush.bf16.msra.mxu1 %v754_v36  ;;  %v837_v43 = vld [vmem:[%s1182_s4] ss:$0 sm:$0xff]  ;;  %s551_s27 = scalar_lea.sflag [#allocation4], %s323_s12  ;;  %s917_s8 = sshra.s32 %s567_s30, 4  ;;  %s918_s8 = int_to_ptr.hbm [resolvable:$true] %s917_s8 }
  0x25   : > { %342 = vadd.xlane.f32.xlu0 %v341_v5  ;;  %442 = vmatpush.bf16.msra.mxu0 %v745_v13  ;;  %v838_v61 = vld [vmem:[%s1184_s6] ss:$0 sm:$0xff]  ;;  %s919_s10 = scalar_lea.hbm %s918_s8, 8  ;;  %s923_s17 = scalar_lea.hbm %s1185_s7, 16 }
  0x26   : > { %p920_p1 = scmp.ne.s32.totalorder %s918_s8, %s919_s10  ;;  %p924_p5 = scmp.lt.s32.totalorder %s918_s8, %s1185_s7 }
  0x27   : > { %p925_p6 = scmp.lt.s32.totalorder %s923_s17, %s919_s10 }
  0x28   : > { %537 = vmatpush.bf16.msra.mxu1 %v753_v37  ;;  %p921_p2 = pnand %p920_p1, %p1076_p4 }
  0x29   : > { %443 = vmatpush.bf16.msra.mxu0 %v744_v14  ;;  %p926_p7 = por %p925_p6, %p924_p5 }
  0x2a   : > { %p922_p3 = pneg %p921_p2 }
  0x2c   : > { %538 = vmatpush.bf16.msra.mxu1 %v752_v38  ;;  %p927_p9 = pnand %p926_p7, %p922_p3 }
  0x2d   : > { %444 = vmatpush.bf16.msra.mxu0 %v743_v15 }
  0x30   : > { %539 = vmatpush.bf16.msra.mxu1 %v751_v39 }
  0x31   : > { %445 = vmatpush.bf16.msra.mxu0 %v742_v16 }
  0x34   : > { %540 = vmatpush.bf16.msra.mxu1 %v750_v40 }
  0x35   : > { %446 = vmatpush.bf16.msra.mxu0 %v741_v17 }
  0x38   : > { %541 = vmatpush.bf16.msra.mxu1 %v749_v41 }
  0x39   : > { %447 = vmatpush.bf16.msra.mxu0 %v740_v18 }
  0x3c   : > { %542 = vmatpush.bf16.msra.mxu1 %v748_v42 }
  0x98   : > { %v343_v7 = vpop.xlane.xlu0 %342 }
  0x99   : > { %v344_v8 = vmul.f32 0.03125, %v343_v7 }
  0x9b   : > { %v345_v9 = vsub.f32 %v1124_v4, %v344_v8 }
  0x9d   : > { %v346_v10 = vmul.f32 %v671_v3, %v345_v9 }
  0x9f   : > { %v347_v11 = vmul.f32 %v346_v10, %v346_v10 }
  0xa1   : > { %348 = vadd.xlane.f32.xlu0 %v347_v11 }
 0x114   : > { %v349_v19 = vpop.xlane.xlu0 %348 }
 0x115   : > { %v350_v20 = vmul.f32 0.03125, %v349_v19 }
 0x117   : > { %v351_v21 = vadd.f32 1e-05, %v350_v20 }
 0x119   : > { %839 = vrsqrt.f32 %v351_v21  ;;  %vm358_vm2 = vweird.f32 %v351_v21 }
 0x11f   : > { %v840_v22 = vpop.eup %839 }
 0x120   : > { %v353_v23 = vmul.f32 %v840_v22, %v351_v21  ;;  %vm359_vm1 = vweird.f32 %v840_v22 }
 0x121   : > { %vm360_vm3 = vmor %vm358_vm2, %vm359_vm1 }
 0x122   : > { %v354_v24 = vmul.f32 %v840_v22, %v353_v23 }
 0x124   : > { %v355_v25 = vmul.f32 0.5, %v354_v24 }
 0x126   : > { %v356_v26 = vsub.f32 1.5, %v355_v25 }
 0x128   : > { %v357_v27 = vmul.f32 %v840_v22, %v356_v26 }
 0x12a   : > { %v361_v29 = vsel %vm360_vm3, %v840_v22, %v357_v27 }
 0x12b   : > { %v362_v30 = vmul.f32 %v361_v29, %v346_v10 }
 0x12d   : > { %v366_v32 = vmul.f32 %v835_v28, %v362_v30 }
 0x12f   : > { %v370_v33 = vadd.f32 %v836_v31, %v366_v32 }
 0x131   : > { %v371_v34 = vpack.c.bf16 %v370_v33, %v370_v33 }
 0x133   : > { %448 = vmatmul.bf16.vlgmr.msra.gmra.mxu0 %v371_v34 }
 0x1b0   : > { %v449_v44 = vpop.f32.mrf.mxu0 }
 0x1b1   : > { %v450_v45 = vadd.f32 %v837_v43, %v449_v44 }
 0x1b3   : > { %v453_v46 = vmul.f32 0.044715, %v450_v45  ;;  %v463_v57 = vmul.f32 0.5, %v450_v45 }
 0x1b5   : > { %v454_v47 = vmul.f32 %v453_v46, %v450_v45 }
 0x1b7   : > { %v455_v48 = vmul.f32 %v454_v47, %v450_v45 }
 0x1b8   : > { %v451_v49 = vpop.f32.mrf.mxu0 }
 0x1b9   : > { %v456_v50 = vadd.f32 %v455_v48, %v450_v45 }
 0x1bb   : > { %v457_v51 = vmul.f32 0.7978846, %v456_v50 }
 0x1bd   : > { %v458_v52 = vpack.c.bf16 %v457_v51, %v457_v51 }
 0x1bf   : > { %v459_v53 = vunpack.c.l.bf16 %v458_v52 }
 0x1c1   : > { %841 = vtanh.f32 %v459_v53 }
 0x1c7   : > { %v842_v54 = vpop.eup %841 }
 0x1c8   : > { %v461_v55 = vpack.c.bf16 %v842_v54, %v842_v54 }
 0x1ca   : > { %v462_v56 = vunpack.c.l.bf16 %v461_v55 }
 0x1cc   : > { %v464_v58 = vadd.f32 1.0, %v462_v56 }
 0x1ce   : > { %v465_v59 = vmul.f32 %v464_v58, %v463_v57 }
 0x1d0   : > { %v466_v60 = vpack.c.bf16 %v465_v59, %v465_v59 }
 0x1d2   : > { %543 = vmatmul.bf16.vlgmr.msra.gmra.mxu1 %v466_v60 }
 0x24f   : > { %v544_v62 = vpop.f32.mrf.mxu1 }
 0x250   : > { %v545_v63 = vadd.f32 %v838_v61, %v544_v62 }
 0x252   : > { %v548_v0 = vadd.f32 %v545_v63, %v1124_v4 }
 0x254   : > { %549 = vst [vmem:[%s325_s22] sm:$0xff] %v548_v0 }
 0x255   : > { %930 = shalt.err (!%p927_p9)
}
 0x256   : > { %764 = dma.vmem_to_hbm [thread:$0]  (%p1076_p4), %s565_s23, 128, %s567_s30, %s551_s27  }
 0x257   : > { %v546_v1 = vpop.f32.mrf.mxu1 }
 0x258 PF: > { %p781_p10 = scmp.ge.s32.totalorder %s989_s29, 2  ;;  %s578_s12 = sand.u32 1, %s969_s24  }
 0x259   : > { %s579_s21 = scalar_lea.sflag [#allocation4], %s578_s12 }
 0x25a   : > { %p774_p11 = pnand %p781_p10, %p1083_p8 }
 0x25c   : > { %p775_p12 = pneg %p774_p11 }
 0x25e   : > { %964 = dma.done.wait (%p775_p12), %s579_s21, 128  }
 0x25f   : > { %966 = vsyncadd (%p775_p12), %s579_s21, 4294967168  ;;  %s22_s29 = sadd.s32 1, %s989_s29   ;;  %s1190_s24 = smov %s973_s25 }
 0x260   : > { %p19_p13 = scmp.ge.s32.totalorder %s22_s29, 4   ;;  %s1191_s25 = smov %s977_s26 }
 0x261   : > { %s1192_s26 = smov %s1089_s14  ;;  %s1193_s27 = smov %s985_s28 }
 0x262   : > { %s1194_s28 = smov %s1196_s9  ;;  %21 = sbr.rel (!%p19_p13) target bundleno = 6 (0x6), region = 92 }
 0x267   :  { %585 = vsyncpa [#allocation3], 1 }
 0x268   :  { %587 = vsyncpa [#allocation3 + $0x1], 1 }
 0x269   :  { %588 = vsyncpa [#allocation6], 1 }
 0x26a   :  { %589 = vsyncpa [#allocation4], 1 }
 0x26b   :  { %591 = vsyncpa [#allocation4 + $0x1], 1 }

</bundles_post_ra>
